<compile_context>
chip_gen: v5e
topology: v5e:2x2
jax: 0.10.0
libtpu: 0.0.40
codegen_flags: <defaults>
</compile_context>

<pallas_src>
import functools

import numpy as np

import jax
import jax.numpy as jnp
from jax import lax
from jax.experimental import pallas as pl
from jax.experimental.pallas import tpu as pltpu

SCALE = 4   # Res2Net scale (number of channel splits)
KT = 2      # temporal kernel taps: kernel size (1, 2), causal, dilated


# ---------------------------------------------------------------------------
# Pallas kernel: one lane-dense MXU matmul + bias + gated activation per tile.
# ---------------------------------------------------------------------------
def tconv_kernel(x_ref, w_ref, b_ref, o_ref, *, n_out):
    """x_ref: (bn, T*Cin) mxu dtype   w_ref: (T*Cin, 2*T*Cout) mxu dtype
       b_ref: (1, 2*T*Cout) f32       o_ref: (bn, T*Cout)"""
    pre = jnp.dot(x_ref[...], w_ref[...],
                  preferred_element_type=jnp.float32) + b_ref[...]
    filt = pre[:, :n_out]                      # [filter | gate] column layout
    gate = pre[:, n_out:]
    # Element-wise math stays f32 (v5e has no bf16 VPU/EUP).
    o_ref[...] = (jnp.tanh(filt) * jax.nn.sigmoid(gate)).astype(o_ref.dtype)


# ---------------------------------------------------------------------------
# Reference Res2Net branch + host-side precomposition of the affine chain.
# ---------------------------------------------------------------------------
def _branch_apply(x, w1, b1, wk, bk, dilation):
    """Reference Res2Net branch (pre-activation), channels-last.
    x: (..., T, Cin) -> (..., T, Cout)."""
    t_len = x.shape[-2]
    width = w1.shape[1] // SCALE
    hp = lax.Precision.HIGHEST
    y = jnp.einsum("...tc,cd->...td", x, w1, precision=hp) + b1
    outs, prev = [], None
    for i in range(SCALE):
        yi = y[..., i * width:(i + 1) * width]
        if i == 0:
            out_i = yi
        else:
            h = yi + prev
            pad = [(0, 0)] * (h.ndim - 2) + [(dilation, 0), (0, 0)]
            h_shift = jnp.pad(h, pad)[..., :t_len, :]   # causal dilated shift
            out_i = (jnp.einsum("...tc,cd->...td", h_shift, wk[i - 1, 0], precision=hp)
                     + jnp.einsum("...tc,cd->...td", h, wk[i - 1, 1], precision=hp)
                     + bk[i - 1])
        outs.append(out_i)
        prev = out_i
    return jnp.concatenate(outs, axis=-1)


def _branch_affine(w1, b1, wk, bk, *, t_len, dilation):
    """Exact affine form of one branch on a single node (row-major flattening):
    branch(x) == x.reshape(T*Cin) @ M + c, with M: (T*Cin, T*Cout)."""
    cin, cout = w1.shape
    k = t_len * cin
    zero = jnp.zeros((t_len, cin), jnp.float32)
    c = _branch_apply(zero, w1, b1, wk, bk, dilation).reshape(t_len * cout)
    basis = jnp.eye(k, dtype=jnp.float32).reshape(k, t_len, cin)
    m = (_branch_apply(basis, w1, b1, wk, bk, dilation).reshape(k, t_len * cout)
         - c[None, :])
    return m, c


def _fuse_params(params, *, t_len, dilation):
    """Precompose both branches into one f32 weight (T*Cin, 2*T*Cout) + bias."""
    mf, cf = _branch_affine(params["wf1"], params["bf1"], params["wfk"],
                            params["bfk"], t_len=t_len, dilation=dilation)
    mg, cg = _branch_affine(params["wg1"], params["bg1"], params["wgk"],
                            params["bgk"], t_len=t_len, dilation=dilation)
    w_big = jnp.concatenate([mf, mg], axis=1)      # columns: [filter | gate]
    b_big = jnp.concatenate([cf, cg])[None, :]
    return w_big, b_big


# ---------------------------------------------------------------------------
# Tiling heuristics (padding / double-buffer aware VMEM budget).
# ---------------------------------------------------------------------------
def _pick_block_nodes(bn, n_dim):
    """Largest multiple-of-8 divisor of bn within a VMEM-friendly cap,
    preferring >= 2 grid steps so both v7x TensorCores and the software
    pipeline stay busy.  Falls back to the full extent (always legal)."""
    cap = max(8, min(512, (2 << 20) // (n_dim * 4)))   # ~2 MiB of f32 pre-acts
    cap -= cap % 8
    cands = [d for d in range(8, bn + 1, 8) if bn % d == 0 and d <= cap]
    if not cands:
        return bn
    best = max(cands)
    if bn // best < 2:
        multi = [d for d in cands if bn // d >= 2]
        if multi:
            best = max(multi)
    return best


def _vmem_limit_bytes(block_nodes, k_dim, n_dim, n_out, in_isz, out_isz):
    pad = lambda n: -(-n // 128) * 128                 # lane padding
    est = (2 * block_nodes * pad(k_dim) * in_isz       # x tile, double-buffered
           + 2 * pad(k_dim) * pad(n_dim) * in_isz      # resident fused weights
           + 2 * pad(n_dim) * 4                        # bias
           + 2 * block_nodes * pad(n_out) * out_isz    # out tile, double-buffered
           + 3 * block_nodes * pad(n_dim) * 4)         # pre/activation f32 temps
    # >= 24 MiB floor for compiler headroom, <= 56 MiB (v7x has 64 MiB / TC).
    return int(min(max(2 * est, 24 << 20), 56 << 20))


# ---------------------------------------------------------------------------
# Forward wrappers.
# ---------------------------------------------------------------------------
def tconv_forward_channels_last(x_bntc, params, *, dilation, block_nodes=None,
                                mxu_dtype=jnp.bfloat16):
    """Channels-last entry point: x (B, N, T, Cin) -> (B, N, T, Cout)."""
    B, N, T, Cin = x_bntc.shape
    Cout = params["wf1"].shape[1]
    assert Cout % SCALE == 0
    BN = B * N
    k_dim, n_out = T * Cin, T * Cout
    n_dim = 2 * n_out

    w_big, b_big = _fuse_params(params, t_len=T, dilation=dilation)
    w_big = w_big.astype(mxu_dtype)
    b_big = b_big.astype(jnp.float32)

    # Rows = nodes, lanes = T*Cin (dense); bf16 halves the input DMA bytes.
    x_rows = x_bntc.reshape(BN, k_dim).astype(mxu_dtype)

    if block_nodes is None:
        block_nodes = _pick_block_nodes(BN, n_dim)
    assert BN % block_nodes == 0, "B*N must be divisible by block_nodes"
    grid = (BN // block_nodes,)

    out = pl.pallas_call(
        functools.partial(tconv_kernel, n_out=n_out),
        out_shape=jax.ShapeDtypeStruct((BN, n_out), x_bntc.dtype),
        grid=grid,
        in_specs=[
            pl.BlockSpec((block_nodes, k_dim), lambda i: (i, 0)),
            pl.BlockSpec((k_dim, n_dim), lambda i: (0, 0)),   # resident weights
            pl.BlockSpec((1, n_dim), lambda i: (0, 0)),       # resident bias
        ],
        out_specs=pl.BlockSpec((block_nodes, n_out), lambda i: (i, 0)),
        compiler_params=pltpu.CompilerParams(
            dimension_semantics=("parallel",),
            vmem_limit_bytes=_vmem_limit_bytes(
                block_nodes, k_dim, n_dim, n_out,
                np.dtype(mxu_dtype).itemsize, x_bntc.dtype.itemsize)),
    )(x_rows, w_big, b_big)

    return out.reshape(B, N, T, Cout)


def tconv_forward(x_nchw, params, *, dilation, block_nodes=None,
                  mxu_dtype=jnp.bfloat16):
    """NCHW entry point matching the PyTorch module: x (B, Cin, N, T)."""
    # TODO(synk): these NCHW<->channels-last transposes are full HBM round
    # trips; keep activations channels-last across model layers to drop them.
    x_bntc = jnp.transpose(x_nchw, (0, 2, 3, 1))
    out = tconv_forward_channels_last(x_bntc, params, dilation=dilation,
                                      block_nodes=block_nodes,
                                      mxu_dtype=mxu_dtype)
    return jnp.transpose(out, (0, 3, 1, 2))


# ---------------------------------------------------------------------------
# Pure-JAX reference and deterministic synthetic parameters.
# ---------------------------------------------------------------------------
def _reference_tconv(x_nchw, params, *, dilation):
    """Pure-JAX reference (unfused, f32, explicit zero-pad causal shift)."""
    x = jnp.transpose(x_nchw, (0, 2, 3, 1))
    f = _branch_apply(x, params["wf1"], params["bf1"], params["wfk"],
                      params["bfk"], dilation)
    g = _branch_apply(x, params["wg1"], params["bg1"], params["wgk"],
                      params["bgk"], dilation)
    out = jnp.tanh(f) * jax.nn.sigmoid(g)
    return jnp.transpose(out, (0, 3, 1, 2))


def init_params(key, c_in, c_out):
    """Deterministic synthetic weights (PyTorch-style uniform fan-in init)."""
    assert c_out % SCALE == 0
    width = c_out // SCALE
    ks = jax.random.split(key, 8)
    s1 = 1.0 / jnp.sqrt(jnp.float32(c_in))
    s2 = 1.0 / jnp.sqrt(jnp.float32(width * KT))
    u = lambda k, shp, s: jax.random.uniform(k, shp, jnp.float32, -s, s)
    return {
        # filter branch (tanh path)
        "wf1": u(ks[0], (c_in, c_out), s1),
        "bf1": u(ks[1], (1, c_out), s1),
        "wfk": u(ks[2], (SCALE - 1, KT, width, width), s2),
        "bfk": u(ks[3], (SCALE - 1, 1, width), s2),
        # gate branch (sigmoid path)
        "wg1": u(ks[4], (c_in, c_out), s1),
        "bg1": u(ks[5], (1, c_out), s1),
        "wgk": u(ks[6], (SCALE - 1, KT, width, width), s2),
        "bgk": u(ks[7], (SCALE - 1, 1, width), s2),
    }


if __name__ == "__main__":
    key = jax.random.PRNGKey(0)
    kx, kp = jax.random.split(key)

    # TConv(residual_channels=32, conv_channels=32, kernel_set=[2,3,6,7],
    #       dilation_factor=2, dropout=0.3); x is NCHW = (B, C_in, N_nodes, T)
    B, Cin, N, T = 2, 32, 8, 16
    Cout = 32
    dilation = 2

    x = jax.random.normal(kx, (B, Cin, N, T), jnp.float32)
    params = init_params(kp, Cin, Cout)

    fwd = jax.jit(functools.partial(tconv_forward, dilation=dilation))
    y = fwd(x, params)
    jax.block_until_ready(y)
    assert y.shape == (B, Cout, N, T), y.shape
    assert bool(jnp.isfinite(y).all())

    y_ref = _reference_tconv(x, params, dilation=dilation)

    # (1) Tight check of the host-side precomposition (pure XLA, f32 HIGHEST):
    #     validates the single-matmul rewrite independently of MXU precision.
    w_big, b_big = _fuse_params(params, t_len=T, dilation=dilation)
    x_rows = jnp.transpose(x, (0, 2, 3, 1)).reshape(B * N, T * Cin)
    pre = jnp.dot(x_rows, w_big, precision=lax.Precision.HIGHEST) + b_big
    n_out = T * Cout
    fused = jnp.tanh(pre[:, :n_out]) * jax.nn.sigmoid(pre[:, n_out:])
    fused = jnp.transpose(fused.reshape(B, N, T, Cout), (0, 3, 1, 2))
    err_fuse = float(jnp.max(jnp.abs(fused - y_ref)))
    assert err_fuse < 1e-4, f"precomposed affine map mismatch: {err_fuse}"

    # (2) Pallas kernel (bf16 MXU operands, f32 accumulation & element-wise)
    #     vs reference.  Tolerance documents the bf16 operand-quantization
    #     bound over a K = T*Cin contraction; a shift/mask/layout bug would
    #     produce O(0.5) errors and fail this check.
    err_max = float(jnp.max(jnp.abs(y - y_ref)))
    err_mean = float(jnp.mean(jnp.abs(y - y_ref)))
    assert err_max < 1e-1 and err_mean < 1.5e-2, (err_max, err_mean)

    print("KERNEL_OK")
</pallas_src>

<mosaic_0001>
module attributes {stable_mosaic.version = 11 : i64} {
  func.func @tconv_kernel(%arg0: i32, %arg1: memref<8x512xbf16, #tpu.memory_space<vmem>>, %arg2: memref<512x1024xbf16, #tpu.memory_space<vmem>>, %arg3: memref<1x1024xf32, #tpu.memory_space<vmem>>, %arg4: memref<8x512xf32, #tpu.memory_space<vmem>>) attributes {dimension_semantics = [#tpu.dimension_semantics<parallel>], iteration_bounds = array<i64: 2>, scalar_prefetch = 0 : i64, scratch_operands = 0 : i64, tpu.core_type = #tpu.core_type<tc>, window_params = [{transform_indices = @transform_0, window_bounds = array<i64: 8, 512>}, {pipeline_mode = #tpu.pipeline_mode<synchronous>, transform_indices = @transform_1, window_bounds = array<i64: 512, 1024>}, {pipeline_mode = #tpu.pipeline_mode<synchronous>, transform_indices = @transform_2, window_bounds = array<i64: 1, 1024>}, {transform_indices = @transform_3, window_bounds = array<i64: 8, 512>}]} {
    %c0 = arith.constant 0 : index
    %c0_0 = arith.constant 0 : index
    %0 = vector.load %arg1[%c0, %c0_0] : memref<8x512xbf16, #tpu.memory_space<vmem>>, vector<8x512xbf16>
    %c0_1 = arith.constant 0 : index
    %c0_2 = arith.constant 0 : index
    %1 = vector.load %arg2[%c0_1, %c0_2] : memref<512x1024xbf16, #tpu.memory_space<vmem>>, vector<512x1024xbf16>
    %cst = arith.constant dense<0.000000e+00> : vector<8x1024xf32>
    %2 = tpu.matmul %0, %1, %cst {dimension_numbers = #tpu.dot_dimension_numbers<[1], [0], [0], [1], [0, 0, 1, 1], [], []>} : vector<8x512xbf16>, vector<512x1024xbf16>, vector<8x1024xf32> -> vector<8x1024xf32>
    %c0_3 = arith.constant 0 : index
    %c0_4 = arith.constant 0 : index
    %3 = vector.load %arg3[%c0_3, %c0_4] : memref<1x1024xf32, #tpu.memory_space<vmem>>, vector<1x1024xf32>
    %4 = vector.broadcast %3 : vector<1x1024xf32> to vector<8x1024xf32>
    %5 = arith.addf %2, %4 : vector<8x1024xf32>
    %6 = vector.extract_strided_slice %5 {offsets = [0, 0], sizes = [8, 512], strides = [1, 1]} : vector<8x1024xf32> to vector<8x512xf32>
    %7 = vector.extract_strided_slice %5 {offsets = [0, 512], sizes = [8, 512], strides = [1, 1]} : vector<8x1024xf32> to vector<8x512xf32>
    %8 = math.tanh %6 : vector<8x512xf32>
    %9 = arith.negf %7 : vector<8x512xf32>
    %10 = math.exp %9 : vector<8x512xf32>
    %cst_5 = arith.constant 1.000000e+00 : f32
    %11 = vector.broadcast %cst_5 : f32 to vector<8x512xf32>
    %12 = arith.addf %11, %10 : vector<8x512xf32>
    %13 = arith.divf %11, %12 : vector<8x512xf32>
    %14 = arith.mulf %8, %13 : vector<8x512xf32>
    %c0_6 = arith.constant 0 : index
    %c0_7 = arith.constant 0 : index
    %15 = vector.load %arg4[%c0_6, %c0_7] : memref<8x512xf32, #tpu.memory_space<vmem>>, vector<8x512xf32>
    tpu.vector_store %arg4[%c0_6, %c0_7], %14 {strides = array<i32>} : memref<8x512xf32, #tpu.memory_space<vmem>>, vector<8x512xf32>,
    return
  }
  func.func @transform_0(%arg0: i32) -> (i32, i32) {
    %c0_i32 = arith.constant 0 : i32
    %c0_i32_0 = arith.constant 0 : i32
    return %arg0, %c0_i32 : i32, i32
  }
  func.func @transform_1(%arg0: i32) -> (i32, i32) {
    %c0_i32 = arith.constant 0 : i32
    %c0_i32_0 = arith.constant 0 : i32
    %c0_i32_1 = arith.constant 0 : i32
    return %c0_i32, %c0_i32_0 : i32, i32
  }
  func.func @transform_2(%arg0: i32) -> (i32, i32) {
    %c0_i32 = arith.constant 0 : i32
    %c0_i32_0 = arith.constant 0 : i32
    %c0_i32_1 = arith.constant 0 : i32
    return %c0_i32, %c0_i32_0 : i32, i32
  }
  func.func @transform_3(%arg0: i32) -> (i32, i32) {
    %c0_i32 = arith.constant 0 : i32
    %c0_i32_0 = arith.constant 0 : i32
    return %arg0, %c0_i32 : i32, i32
  }
}

</mosaic_0001>

<bundles_post_ra>
// kernel: sub.9
= control target key start
LH: loop header
LB: loop body
LE: loop exit
PB: predicated region body
PF: predicated region fallthrough
CT: control target
= control target key end

     0   :  { %s35_s8 = smov 96   ;;  %s36_s11 = smov 32   ;;  %vm3_vm0 = vcmask 261120   ;;  %vm9_vm1 = vcmask 1048320   ;;  %vm15_vm2 = vcmask 785920   ;;  %vm21_vm3 = vcmask 523520   ;;  %s63_s0 = inlined_call_operand.vmem [shape: f32[16,32], index: 0, kind: input, shape index: {}]   ;;  %s64_s1 = inlined_call_operand.vmem [shape: f32[512], index: 1, kind: output, shape index: {}]  }
   0x1   :  { %v29_v0 = vld [vmem:[%s63_s0 + $0x3] ss:$4 sm:$0xf]   ;;  %v31_v1 = vld [vmem:[%s63_s0 + $0x1] ss:$4 sm:$0xf]  }
   0x2   :  { %7 = vrot.lane.b32.xlu0 %v29_v0, %s35_s8  ;;  %19 = vrot.lane.b32.xlu1 %v31_v1, %s36_s11  ;;  %v30_v2 = vld [vmem:[%s63_s0 + $0x2] ss:$4 sm:$0xf]   ;;  %s37_s14 = smov 64  }
   0x3   :  { %v2_v3 = vld [vmem:[%s63_s0] ss:$4 sm:$0xf]  }
   0x4   :  { %4 = vst.msk [vmem:[#allocation0] sm:$0xf] %vm3_vm0, %v2_v3  }
   0xa   :  { %13 = vrot.lane.b32.xlu0 %v30_v2, %s37_s14 }
  0x74   :  { %v8_v4 = vpop.permute.xlu0 %7   ;;  %v20_v5 = vpop.permute.xlu1 %19  }
  0x75   :  { %10 = vst.msk [vmem:[#allocation0] sm:$0xf] %vm9_vm1, %v8_v4  }
  0x7c   :  { %v14_v6 = vpop.permute.xlu0 %13  }
  0x7d   :  { %16 = vst.msk [vmem:[#allocation0] sm:$0xf] %vm15_vm2, %v14_v6  }
  0x7e   :  { %22 = vst.msk [vmem:[#allocation0] sm:$0xf] %vm21_vm3, %v20_v5  }
  0x85   :  { %v25_v7 = vld [vmem:[#allocation0] sm:$0xf] }
  0x86   :  { %28 = vst [vmem:[%s64_s1] sm:$0xf] %v25_v7 }

// kernel: tconv_forward.1
= control target key start
LH: loop header
LB: loop body
LE: loop exit
PB: predicated region body
PF: predicated region fallthrough
CT: control target
= control target key end

     0   :  { %s3657_s12 = smov 0   ;;  %s5289_s0 = inlined_call_operand.vmem [shape: bf16[16,512], index: 0, kind: input, shape index: {}]   ;;  %s5290_s1 = inlined_call_operand.vmem [shape: bf16[512,1024], index: 1, kind: input, shape index: {}]   ;;  %s5291_s2 = inlined_call_operand.vmem [shape: f32[1,1024], index: 2, kind: input, shape index: {}]   ;;  %s5292_s3 = inlined_call_operand.vmem [shape: f32[16,512], index: 3, kind: output, shape index: {}]  }
   0x1 LB: > { %s2300_s13 = sadd.s32 4294967295, %s3635_s12   ;;  %p2304_p0 = scmp.ge.s32.totalorder %s3635_s12, 1  ;;  %s3635_s12 = sphi %s3657_s12, %s13_s12  }
   0x2   : > { %p137_p1 = scmp.lt.s32.totalorder %s3635_s12, 3 }
   0x4   : > { %p138_p2 = pnand %p2304_p0, %p137_p1 }
   0x5   : > { %p161_p3 = scmp.lt.s32.totalorder (!%p138_p2), %s2300_s13, 1 }
   0x6   : > { %141 = sbr.rel (%p138_p2) target bundleno = 470 (0x1d6), region = 32 }
   0xb   : > { %v2535_v0 = vld [vmem:[%s5290_s1 + $0x1c0] sm:$0xf]  ;;  %s5294_s13 = smov (!%p161_p3, %s2300_s13), 1 }
   0xc   : > { %v3401_v1 = vld [vmem:[%s5290_s1 + $0x1dc] sm:$0xf0]  ;;  %s3339_s10 = sshll.u32 %s5294_s13, 4  ;;  %s3340_s19 = sshll.u32 %s5294_s13, 5 }
   0xd   : > { %v2791_v2 = vld [vmem:[%s5290_s1 + $0x3c0] sm:$0xf]  ;;  %v2536_v3 = vor.u32 %v3401_v1, %v2535_v0  ;;  %s165_s21 = scalar_lea.vmem %s5289_s0, %s3339_s10  ;;  %s5275_s22 = scalar_lea.vmem %s5292_s3, %s3340_s19 }
   0xe   : > { %v3465_v4 = vld [vmem:[%s5290_s1 + $0x3dc] sm:$0xf0] }
   0xf   : > { %v3047_v5 = vld [vmem:[%s5290_s1 + $0x5c0] sm:$0xf]  ;;  %v2792_v7 = vor.u32 %v3465_v4, %v2791_v2  ;;  %1741 = vmatpush.bf16.msra.mxu0 %v2536_v3 }
  0x10   : > { %v3529_v6 = vld [vmem:[%s5290_s1 + $0x5dc] sm:$0xf0] }
  0x11   : > { %v3048_v8 = vor.u32 %v3529_v6, %v3047_v5  ;;  %v3303_v9 = vld [vmem:[%s5290_s1 + $0x7c0] sm:$0xf]  ;;  %1754 = vmatpush.bf16.msra.mxu1 %v2792_v7 }
  0x12   : > { %v3593_v10 = vld [vmem:[%s5290_s1 + $0x7dc] sm:$0xf0] }
  0x13   : > { %v2503_v11 = vld [vmem:[%s5290_s1 + $0x180] sm:$0xf]  ;;  %v3304_v12 = vor.u32 %v3593_v10, %v3303_v9  ;;  %1767 = vmatpush.bf16.msra.mxu2 %v3048_v8 }
  0x14   : > { %v3393_v13 = vld [vmem:[%s5290_s1 + $0x19c] sm:$0xf0] }
  0x15   : > { %v2759_v14 = vld [vmem:[%s5290_s1 + $0x380] sm:$0xf]  ;;  %v2504_v16 = vor.u32 %v3393_v13, %v2503_v11  ;;  %1780 = vmatpush.bf16.msra.mxu3 %v3304_v12 }
  0x16   : > { %v3457_v15 = vld [vmem:[%s5290_s1 + $0x39c] sm:$0xf0] }
  0x17   : > { %v2760_v17 = vor.u32 %v3457_v15, %v2759_v14  ;;  %v3015_v18 = vld [vmem:[%s5290_s1 + $0x580] sm:$0xf]  ;;  %1742 = vmatpush.bf16.msra.mxu0 %v2504_v16 }
  0x18   : > { %v3521_v19 = vld [vmem:[%s5290_s1 + $0x59c] sm:$0xf0] }
  0x19   : > { %v3271_v20 = vld [vmem:[%s5290_s1 + $0x780] sm:$0xf]  ;;  %v3016_v21 = vor.u32 %v3521_v19, %v3015_v18  ;;  %1755 = vmatpush.bf16.msra.mxu1 %v2760_v17 }
  0x1a   : > { %v3585_v22 = vld [vmem:[%s5290_s1 + $0x79c] sm:$0xf0] }
  0x1b   : > { %v2471_v23 = vld [vmem:[%s5290_s1 + $0x140] sm:$0xf]  ;;  %v3272_v25 = vor.u32 %v3585_v22, %v3271_v20  ;;  %1768 = vmatpush.bf16.msra.mxu2 %v3016_v21 }
  0x1c   : > { %v3385_v24 = vld [vmem:[%s5290_s1 + $0x15c] sm:$0xf0] }
  0x1d   : > { %v2727_v26 = vld [vmem:[%s5290_s1 + $0x340] sm:$0xf]  ;;  %v2472_v29 = vor.u32 %v3385_v24, %v2471_v23  ;;  %1781 = vmatpush.bf16.msra.mxu3 %v3272_v25 }
  0x1e   : > { %v3449_v27 = vld [vmem:[%s5290_s1 + $0x35c] sm:$0xf0] }
  0x1f   : > { %v2983_v28 = vld [vmem:[%s5290_s1 + $0x540] sm:$0xf]  ;;  %v2728_v33 = vor.u32 %v3449_v27, %v2727_v26  ;;  %1743 = vmatpush.bf16.msra.mxu0 %v2472_v29  ;;  %v2537_v29 = vld [vmem:[%s5290_s1 + $0x1e0] sm:$0xf0] }
  0x20   : > { %v3513_v30 = vld [vmem:[%s5290_s1 + $0x55c] sm:$0xf0] }
  0x21   : > { %v3239_v31 = vld [vmem:[%s5290_s1 + $0x740] sm:$0xf]  ;;  %v2984_v34 = vor.u32 %v3513_v30, %v2983_v28  ;;  %1756 = vmatpush.bf16.msra.mxu1 %v2728_v33  ;;  %v3397_v28 = vld [vmem:[%s5290_s1 + $0x1c4] sm:$0xf] }
  0x22   : > { %v3577_v32 = vld [vmem:[%s5290_s1 + $0x75c] sm:$0xf0]  ;;  %v3461_v30 = vld [vmem:[%s5290_s1 + $0x3c4] sm:$0xf] }
  0x23   : > { %v2439_v35 = vld [vmem:[%s5290_s1 + $0x100] sm:$0xf]  ;;  %v3240_v38 = vor.u32 %v3577_v32, %v3239_v31  ;;  %1769 = vmatpush.bf16.msra.mxu2 %v2984_v34  ;;  %v2793_v32 = vld [vmem:[%s5290_s1 + $0x3e0] sm:$0xf0] }
  0x24   : > { %v3377_v36 = vld [vmem:[%s5290_s1 + $0x11c] sm:$0xf0]  ;;  %v3525_v33 = vld [vmem:[%s5290_s1 + $0x5c4] sm:$0xf] }
  0x25   : > { %v2695_v37 = vld [vmem:[%s5290_s1 + $0x300] sm:$0xf]  ;;  %v2440_v44 = vor.u32 %v3377_v36, %v2439_v35  ;;  %1782 = vmatpush.bf16.msra.mxu3 %v3240_v38  ;;  %v3049_v34 = vld [vmem:[%s5290_s1 + $0x5e0] sm:$0xf0] }
  0x26   : > { %v3441_v39 = vld [vmem:[%s5290_s1 + $0x31c] sm:$0xf0]  ;;  %v3305_v38 = vld [vmem:[%s5290_s1 + $0x7e0] sm:$0xf0] }
  0x27   : > { %v2951_v40 = vld [vmem:[%s5290_s1 + $0x500] sm:$0xf]  ;;  %v2696_v45 = vor.u32 %v3441_v39, %v2695_v37  ;;  %1744 = vmatpush.bf16.msra.mxu0 %v2440_v44  ;;  %v3589_v37 = vld [vmem:[%s5290_s1 + $0x7c4] sm:$0xf] }
  0x28   : > { %v3505_v41 = vld [vmem:[%s5290_s1 + $0x51c] sm:$0xf0]  ;;  %v2505_v44 = vld [vmem:[%s5290_s1 + $0x1a0] sm:$0xf0] }
  0x29   : > { %v3207_v42 = vld [vmem:[%s5290_s1 + $0x700] sm:$0xf]  ;;  %v2952_v46 = vor.u32 %v3505_v41, %v2951_v40  ;;  %1757 = vmatpush.bf16.msra.mxu1 %v2696_v45  ;;  %v2540_v40 = vor.u32 %v3397_v28, %v2537_v29  ;;  %v2796_v41 = vor.u32 %v3461_v30, %v2793_v32  ;;  %v3453_v45 = vld [vmem:[%s5290_s1 + $0x384] sm:$0xf] }
  0x2a   : > { %v3569_v43 = vld [vmem:[%s5290_s1 + $0x71c] sm:$0xf0] }
  0x2b   : > { %v2407_v47 = vld [vmem:[%s5290_s1 + $0xc0] sm:$0xf]  ;;  %v3208_v50 = vor.u32 %v3569_v43, %v3207_v42  ;;  %1770 = vmatpush.bf16.msra.mxu2 %v2952_v46  ;;  %v3052_v42 = vor.u32 %v3525_v33, %v3049_v34  ;;  %v3389_v43 = vld [vmem:[%s5290_s1 + $0x184] sm:$0xf]  ;;  %v3308_v46 = vor.u32 %v3589_v37, %v3305_v38 }
  0x2c   : > { %v3369_v48 = vld [vmem:[%s5290_s1 + $0xdc] sm:$0xf0]  ;;  %v3357_v33 = vld [vmem:[%s5290_s1 + $0x84] sm:$0xf] }
  0x2d   : > { %v2663_v49 = vld [vmem:[%s5290_s1 + $0x2c0] sm:$0xf]  ;;  %v2408_v56 = vor.u32 %v3369_v48, %v2407_v47  ;;  %1783 = vmatpush.bf16.msra.mxu3 %v3208_v50  ;;  %v2761_v47 = vld [vmem:[%s5290_s1 + $0x3a0] sm:$0xf0] }
  0x2e   : > { %v3433_v51 = vld [vmem:[%s5290_s1 + $0x2dc] sm:$0xf0]  ;;  %v3517_v48 = vld [vmem:[%s5290_s1 + $0x584] sm:$0xf] }
  0x2f   : > { %v2919_v52 = vld [vmem:[%s5290_s1 + $0x4c0] sm:$0xf]  ;;  %v2664_v57 = vor.u32 %v3433_v51, %v2663_v49  ;;  %1745 = vmatpush.bf16.msra.mxu0 %v2408_v56  ;;  %v3017_v49 = vld [vmem:[%s5290_s1 + $0x5a0] sm:$0xf0] }
  0x30   : > { %v3497_v53 = vld [vmem:[%s5290_s1 + $0x4dc] sm:$0xf0]  ;;  %v3581_v50 = vld [vmem:[%s5290_s1 + $0x784] sm:$0xf] }
  0x31   : > { %v3175_v54 = vld [vmem:[%s5290_s1 + $0x6c0] sm:$0xf]  ;;  %v2920_v58 = vor.u32 %v3497_v53, %v2919_v52  ;;  %1758 = vmatpush.bf16.msra.mxu1 %v2664_v57  ;;  %v3273_v51 = vld [vmem:[%s5290_s1 + $0x7a0] sm:$0xf0]  ;;  %v2508_v52 = vor.u32 %v3389_v43, %v2505_v44  ;;  %v2764_v53 = vor.u32 %v3453_v45, %v2761_v47 }
  0x32   : > { %v3561_v55 = vld [vmem:[%s5290_s1 + $0x6dc] sm:$0xf0]  ;;  %v2473_v56 = vld [vmem:[%s5290_s1 + $0x160] sm:$0xf0] }
  0x33   : > { %v2375_v59 = vld [vmem:[%s5290_s1 + $0x80] sm:$0xf]  ;;  %v3176_v62 = vor.u32 %v3561_v55, %v3175_v54  ;;  %1771 = vmatpush.bf16.msra.mxu2 %v2920_v58  ;;  %v3020_v54 = vor.u32 %v3517_v48, %v3017_v49  ;;  %v3381_v55 = vld [vmem:[%s5290_s1 + $0x144] sm:$0xf]  ;;  %v3276_v58 = vor.u32 %v3581_v50, %v3273_v51 }
  0x34   : > { %v3361_v60 = vld [vmem:[%s5290_s1 + $0x9c] sm:$0xf0]  ;;  %v3445_v57 = vld [vmem:[%s5290_s1 + $0x344] sm:$0xf] }
  0x35   : > { %v2631_v61 = vld [vmem:[%s5290_s1 + $0x280] sm:$0xf]  ;;  %v2376_v4 = vor.u32 %v3361_v60, %v2375_v59  ;;  %1784 = vmatpush.bf16.msra.mxu3 %v3176_v62  ;;  %v2729_v59 = vld [vmem:[%s5290_s1 + $0x360] sm:$0xf0] }
  0x36   : > { %v3425_v63 = vld [vmem:[%s5290_s1 + $0x29c] sm:$0xf0]  ;;  %v3509_v60 = vld [vmem:[%s5290_s1 + $0x544] sm:$0xf] }
  0x37   : > { %v2887_v0 = vld [vmem:[%s5290_s1 + $0x480] sm:$0xf]  ;;  %v2632_v5 = vor.u32 %v3425_v63, %v2631_v61  ;;  %1746 = vmatpush.bf16.msra.mxu0 %v2376_v4  ;;  %v2985_v61 = vld [vmem:[%s5290_s1 + $0x560] sm:$0xf0] }
  0x38   : > { %v3489_v1 = vld [vmem:[%s5290_s1 + $0x49c] sm:$0xf0]  ;;  %v3573_v62 = vld [vmem:[%s5290_s1 + $0x744] sm:$0xf] }
  0x39   : > { %v3143_v2 = vld [vmem:[%s5290_s1 + $0x680] sm:$0xf]  ;;  %v2888_v6 = vor.u32 %v3489_v1, %v2887_v0  ;;  %1759 = vmatpush.bf16.msra.mxu1 %v2632_v5  ;;  %v3241_v63 = vld [vmem:[%s5290_s1 + $0x760] sm:$0xf0]  ;;  %v2476_v0 = vor.u32 %v3381_v55, %v2473_v56 }
  0x3a   : > { %v3553_v3 = vld [vmem:[%s5290_s1 + $0x69c] sm:$0xf0]  ;;  %v3373_v1 = vld [vmem:[%s5290_s1 + $0x104] sm:$0xf] }
  0x3b   : > { %v2343_v7 = vld [vmem:[%s5290_s1 + $0x40] sm:$0xf]  ;;  %v3144_v10 = vor.u32 %v3553_v3, %v3143_v2  ;;  %1772 = vmatpush.bf16.msra.mxu2 %v2888_v6  ;;  %v2732_v2 = vor.u32 %v3445_v57, %v2729_v59  ;;  %v2988_v3 = vor.u32 %v3509_v60, %v2985_v61  ;;  %v2441_v4 = vld [vmem:[%s5290_s1 + $0x120] sm:$0xf0] }
  0x3c   : > { %v3353_v8 = vld [vmem:[%s5290_s1 + $0x5c] sm:$0xf0]  ;;  %v3437_v5 = vld [vmem:[%s5290_s1 + $0x304] sm:$0xf] }
  0x3d   : > { %v2599_v9 = vld [vmem:[%s5290_s1 + $0x240] sm:$0xf]  ;;  %v2344_v16 = vor.u32 %v3353_v8, %v2343_v7  ;;  %1785 = vmatpush.bf16.msra.mxu3 %v3144_v10  ;;  %v2697_v6 = vld [vmem:[%s5290_s1 + $0x320] sm:$0xf0]  ;;  %v3244_v7 = vor.u32 %v3573_v62, %v3241_v63 }
  0x3e   : > { %v3417_v11 = vld [vmem:[%s5290_s1 + $0x25c] sm:$0xf0]  ;;  %v3501_v8 = vld [vmem:[%s5290_s1 + $0x504] sm:$0xf] }
  0x3f   : > { %v2855_v12 = vld [vmem:[%s5290_s1 + $0x440] sm:$0xf]  ;;  %v2600_v19 = vor.u32 %v3417_v11, %v2599_v9  ;;  %1747 = vmatpush.bf16.msra.mxu0 %v2344_v16  ;;  %v2953_v9 = vld [vmem:[%s5290_s1 + $0x520] sm:$0xf0]  ;;  %v2700_v16 = vor.u32 %v3437_v5, %v2697_v6  ;;  %v2543_v6 = vld [vmem:[%s5290_s1 + $0x1c8] sm:$0xf] }
  0x40   : > { %v3481_v13 = vld [vmem:[%s5290_s1 + $0x45c] sm:$0xf0]  ;;  %v3565_v10 = vld [vmem:[%s5290_s1 + $0x704] sm:$0xf] }
  0x41   : > { %v3111_v14 = vld [vmem:[%s5290_s1 + $0x640] sm:$0xf]  ;;  %v2856_v20 = vor.u32 %v3481_v13, %v2855_v12  ;;  %1760 = vmatpush.bf16.msra.mxu1 %v2600_v19  ;;  %v3209_v11 = vld [vmem:[%s5290_s1 + $0x720] sm:$0xf0]  ;;  %v2444_v13 = vor.u32 %v3373_v1, %v2441_v4 }
  0x42   : > { %v3545_v15 = vld [vmem:[%s5290_s1 + $0x65c] sm:$0xf0]  ;;  %v3365_v12 = vld [vmem:[%s5290_s1 + $0xc4] sm:$0xf] }
  0x43   : > { %v2311_v17 = vld [vmem:[%s5290_s1] sm:$0xf]  ;;  %v3112_v24 = vor.u32 %v3545_v15, %v3111_v14  ;;  %1773 = vmatpush.bf16.msra.mxu2 %v2856_v20  ;;  %v2409_v14 = vld [vmem:[%s5290_s1 + $0xe0] sm:$0xf0] }
  0x44   : > { %v3345_v18 = vld [vmem:[%s5290_s1 + $0x1c] sm:$0xf0]  ;;  %v3429_v15 = vld [vmem:[%s5290_s1 + $0x2c4] sm:$0xf]  ;;  %v2412_v30 = vor.u32 %v3365_v12, %v2409_v14  ;;  %v3530_v12 = vld [vmem:[%s5290_s1 + $0x5e4] sm:$0xf0] }
  0x45   : > { %v2567_v21 = vld [vmem:[%s5290_s1 + $0x200] sm:$0xf]  ;;  %v2312_v31 = vor.u32 %v3345_v18, %v2311_v17  ;;  %1786 = vmatpush.bf16.msra.mxu3 %v3112_v24  ;;  %v2956_v17 = vor.u32 %v3501_v8, %v2953_v9  ;;  %v2665_v18 = vld [vmem:[%s5290_s1 + $0x2e0] sm:$0xf0]  ;;  %v2799_v8 = vld [vmem:[%s5290_s1 + $0x3c8] sm:$0xf] }
  0x46   : > { %v3409_v22 = vld [vmem:[%s5290_s1 + $0x21c] sm:$0xf0]  ;;  %v3493_v19 = vld [vmem:[%s5290_s1 + $0x4c4] sm:$0xf] }
  0x47   : > { %v2823_v23 = vld [vmem:[%s5290_s1 + $0x400] sm:$0xf]  ;;  %v2568_v35 = vor.u32 %v3409_v22, %v2567_v21  ;;  %1748 = vmatpush.bf16.msra.mxu0 %v2312_v31  ;;  %v2921_v20 = vld [vmem:[%s5290_s1 + $0x4e0] sm:$0xf0]  ;;  %v3212_v21 = vor.u32 %v3565_v10, %v3209_v11  ;;  %v172_v22 = vld [vmem:[%s165_s21 + $0x8] sm:$0xff]  ;;  %v2668_v31 = vor.u32 %v3429_v15, %v2665_v18 }
  0x48   : > { %v3473_v25 = vld [vmem:[%s5290_s1 + $0x41c] sm:$0xf0]  ;;  %v3557_v24 = vld [vmem:[%s5290_s1 + $0x6c4] sm:$0xf]  ;;  %v452_v28 = vunpack.c.h.b16 %v172_v22  ;;  %v2924_v32 = vor.u32 %v3493_v19, %v2921_v20  ;;  %v3466_v10 = vld [vmem:[%s5290_s1 + $0x3e4] sm:$0xf0] }
  0x49   : > { %v3079_v26 = vld [vmem:[%s5290_s1 + $0x600] sm:$0xf]  ;;  %v2824_v36 = vor.u32 %v3473_v25, %v2823_v23  ;;  %1761 = vmatpush.bf16.msra.mxu1 %v2568_v35  ;;  %v3177_v25 = vld [vmem:[%s5290_s1 + $0x6e0] sm:$0xf0]  ;;  %v3055_v11 = vld [vmem:[%s5290_s1 + $0x5c8] sm:$0xf]  ;;  %v2800_v19 = vor.u32 %v3466_v10, %v2799_v8 }
  0x4a   : > { %v3537_v27 = vld [vmem:[%s5290_s1 + $0x61c] sm:$0xf0]  ;;  %v2377_v34 = vld [vmem:[%s5290_s1 + $0xa0] sm:$0xf0]  ;;  %v4000_v38 = vpack.c.b16 %v452_v28, %v452_v28  ;;  %v3311_v15 = vld [vmem:[%s5290_s1 + $0x7c8] sm:$0xf]  ;;  %v3056_v20 = vor.u32 %v3530_v12, %v3055_v11 }
  0x4b   : > { %v3080_v39 = vor.u32 %v3537_v27, %v3079_v26  ;;  %1774 = vmatpush.bf16.msra.mxu2 %v2824_v36  ;;  %1793 = vmatpush.bf16.msrb.mxu0 %v2540_v40  ;;  %v171_v23 = vld [vmem:[%s165_s21] sm:$0xff]  ;;  %v451_v26 = vunpack.c.l.b16 %v172_v22  ;;  %v3394_v22 = vld [vmem:[%s5290_s1 + $0x1a4] sm:$0xf0] }
  0x4c   : > { %v449_v27 = vunpack.c.l.b16 %v171_v23  ;;  %v450_v29 = vunpack.c.h.b16 %v171_v23  ;;  %v3421_v35 = vld [vmem:[%s5290_s1 + $0x284] sm:$0xf]  ;;  %v2767_v23 = vld [vmem:[%s5290_s1 + $0x388] sm:$0xf] }
  0x4d   : > { %1787 = vmatpush.bf16.msra.mxu3 %v3080_v39  ;;  %1806 = vmatpush.bf16.msrb.mxu1 %v2796_v41  ;;  %v3996_v36 = vpack.c.b16 %v451_v26, %v451_v26  ;;  %v3180_v39 = vor.u32 %v3557_v24, %v3177_v25  ;;  %v2633_v40 = vld [vmem:[%s5290_s1 + $0x2a0] sm:$0xf0]  ;;  %v3458_v25 = vld [vmem:[%s5290_s1 + $0x3a4] sm:$0xf0] }
  0x4e   : > { %v3998_v37 = vpack.c.b16 %v449_v27, %v449_v27  ;;  %v3485_v41 = vld [vmem:[%s5290_s1 + $0x484] sm:$0xf]  ;;  %v4011_v43 = vpack.c.b16 %v450_v29, %v450_v29  ;;  %v2636_v47 = vor.u32 %v3421_v35, %v2633_v40  ;;  %v3023_v26 = vld [vmem:[%s5290_s1 + $0x588] sm:$0xf] }
  0x4f   : > { %1819 = vmatpush.bf16.msrb.mxu2 %v3052_v42  ;;  %1794 = vmatpush.bf16.msrb.mxu0 %v2508_v52  ;;  %v2889_v42 = vld [vmem:[%s5290_s1 + $0x4a0] sm:$0xf0]  ;;  %v3522_v27 = vld [vmem:[%s5290_s1 + $0x5a4] sm:$0xf0] }
  0x50   : > { %v3549_v44 = vld [vmem:[%s5290_s1 + $0x684] sm:$0xf]  ;;  %1775 = vmatmul.bf16.vlgmr.msra.gmra.mxu2 %v3996_v36  ;;  %1749 = vmatmul.bf16.vlgmr.msra.gmra.mxu0 %v3998_v37  ;;  %v2892_v48 = vor.u32 %v3485_v41, %v2889_v42  ;;  %v3279_v28 = vld [vmem:[%s5290_s1 + $0x788] sm:$0xf] }
  0x51   : > { %1832 = vmatpush.bf16.msrb.mxu3 %v3308_v46  ;;  %1807 = vmatpush.bf16.msrb.mxu1 %v2764_v53  ;;  %v3145_v45 = vld [vmem:[%s5290_s1 + $0x6a0] sm:$0xf0]  ;;  %v2380_v46 = vor.u32 %v3357_v33, %v2377_v34  ;;  %v3586_v29 = vld [vmem:[%s5290_s1 + $0x7a4] sm:$0xf0] }
  0x52   : > { %1788 = vmatmul.bf16.vlgmr.msra.gmra.mxu3 %v4000_v38  ;;  %v3349_v49 = vld [vmem:[%s5290_s1 + $0x44] sm:$0xf]  ;;  %v3148_v52 = vor.u32 %v3549_v44, %v3145_v45  ;;  %1762 = vmatmul.bf16.vlgmr.msra.gmra.mxu1 %v4011_v43  ;;  %v2479_v33 = vld [vmem:[%s5290_s1 + $0x148] sm:$0xf] }
  0x53   : > { %1820 = vmatpush.bf16.msrb.mxu2 %v3020_v54  ;;  %1795 = vmatpush.bf16.msrb.mxu0 %v2476_v0  ;;  %v2345_v50 = vld [vmem:[%s5290_s1 + $0x60] sm:$0xf0]  ;;  %v3386_v34 = vld [vmem:[%s5290_s1 + $0x164] sm:$0xf0] }
  0x54   : > { %v3413_v51 = vld [vmem:[%s5290_s1 + $0x244] sm:$0xf]  ;;  %v2735_v35 = vld [vmem:[%s5290_s1 + $0x348] sm:$0xf] }
  0x55   : > { %1833 = vmatpush.bf16.msrb.mxu3 %v3276_v58  ;;  %1808 = vmatpush.bf16.msrb.mxu1 %v2732_v2  ;;  %v2601_v53 = vld [vmem:[%s5290_s1 + $0x260] sm:$0xf0]  ;;  %v2348_v58 = vor.u32 %v3349_v49, %v2345_v50  ;;  %v3450_v40 = vld [vmem:[%s5290_s1 + $0x364] sm:$0xf0] }
  0x56   : > { %v3477_v54 = vld [vmem:[%s5290_s1 + $0x444] sm:$0xf]  ;;  %v2604_v61 = vor.u32 %v3413_v51, %v2601_v53  ;;  %v2991_v41 = vld [vmem:[%s5290_s1 + $0x548] sm:$0xf] }
  0x57   : > { %1821 = vmatpush.bf16.msrb.mxu2 %v2988_v3  ;;  %1796 = vmatpush.bf16.msrb.mxu0 %v2444_v13  ;;  %v2857_v55 = vld [vmem:[%s5290_s1 + $0x460] sm:$0xf0]  ;;  %v3514_v42 = vld [vmem:[%s5290_s1 + $0x564] sm:$0xf0] }
  0x58   : > { %v3541_v56 = vld [vmem:[%s5290_s1 + $0x644] sm:$0xf]  ;;  %v2860_v62 = vor.u32 %v3477_v54, %v2857_v55  ;;  %v3247_v44 = vld [vmem:[%s5290_s1 + $0x748] sm:$0xf] }
  0x59   : > { %1834 = vmatpush.bf16.msrb.mxu3 %v3244_v7  ;;  %1809 = vmatpush.bf16.msrb.mxu1 %v2700_v16  ;;  %v3113_v57 = vld [vmem:[%s5290_s1 + $0x660] sm:$0xf0]  ;;  %v3402_v7 = vld [vmem:[%s5290_s1 + $0x1e4] sm:$0xf0] }
  0x5a   : > { %v3341_v59 = vld [vmem:[%s5290_s1 + $0x4] sm:$0xf]  ;;  %v3116_v2 = vor.u32 %v3541_v56, %v3113_v57  ;;  %v3594_v16 = vld [vmem:[%s5290_s1 + $0x7e4] sm:$0xf0]  ;;  %v2544_v18 = vor.u32 %v3402_v7, %v2543_v6 }
  0x5b   : > { %1822 = vmatpush.bf16.msrb.mxu2 %v2956_v17  ;;  %1797 = vmatpush.bf16.msrb.mxu0 %v2412_v30  ;;  %v2313_v60 = vld [vmem:[%s5290_s1 + $0x20] sm:$0xf0]  ;;  %v3312_v24 = vor.u32 %v3594_v16, %v3311_v15  ;;  %v3578_v45 = vld [vmem:[%s5290_s1 + $0x764] sm:$0xf0] }
  0x5c   : > { %v3405_v63 = vld [vmem:[%s5290_s1 + $0x204] sm:$0xf]  ;;  %v2316_v9 = vor.u32 %v3341_v59, %v2313_v60  ;;  %v2447_v49 = vld [vmem:[%s5290_s1 + $0x108] sm:$0xf] }
  0x5d   : > { %1835 = vmatpush.bf16.msrb.mxu3 %v3212_v21  ;;  %1810 = vmatpush.bf16.msrb.mxu1 %v2668_v31  ;;  %v2569_v0 = vld [vmem:[%s5290_s1 + $0x220] sm:$0xf0]  ;;  %v2511_v21 = vld [vmem:[%s5290_s1 + $0x188] sm:$0xf]  ;;  %v2768_v31 = vor.u32 %v3458_v25, %v2767_v23 }
  0x5e   : > { %v3469_v1 = vld [vmem:[%s5290_s1 + $0x404] sm:$0xf]  ;;  %v2572_v13 = vor.u32 %v3405_v63, %v2569_v0  ;;  %v2512_v30 = vor.u32 %v3394_v22, %v2511_v21  ;;  %v3378_v50 = vld [vmem:[%s5290_s1 + $0x124] sm:$0xf0] }
  0x5f   : > { %1823 = vmatpush.bf16.msrb.mxu2 %v2924_v32  ;;  %1798 = vmatpush.bf16.msrb.mxu0 %v2380_v46  ;;  %v2825_v3 = vld [vmem:[%s5290_s1 + $0x420] sm:$0xf0]  ;;  %v3024_v32 = vor.u32 %v3522_v27, %v3023_v26  ;;  %v2480_v46 = vor.u32 %v3386_v34, %v2479_v33  ;;  %v2703_v51 = vld [vmem:[%s5290_s1 + $0x308] sm:$0xf] }
  0x60   : > { %v3533_v4 = vld [vmem:[%s5290_s1 + $0x604] sm:$0xf]  ;;  %v2828_v14 = vor.u32 %v3469_v1, %v2825_v3  ;;  %v3442_v53 = vld [vmem:[%s5290_s1 + $0x324] sm:$0xf0] }
  0x61   : > { %1836 = vmatpush.bf16.msrb.mxu3 %v3180_v39  ;;  %1811 = vmatpush.bf16.msrb.mxu1 %v2636_v47  ;;  %v3081_v5 = vld [vmem:[%s5290_s1 + $0x620] sm:$0xf0]  ;;  %v3280_v39 = vor.u32 %v3586_v29, %v3279_v28  ;;  %v2736_v47 = vor.u32 %v3450_v40, %v2735_v35  ;;  %v2959_v54 = vld [vmem:[%s5290_s1 + $0x508] sm:$0xf]  ;;  %v2704_v59 = vor.u32 %v3442_v53, %v2703_v51  ;;  %v3526_v51 = vld [vmem:[%s5290_s1 + $0x5cc] sm:$0xf] }
  0x62   : > { %v3084_v17 = vor.u32 %v3533_v4, %v3081_v5  ;;  %v3506_v55 = vld [vmem:[%s5290_s1 + $0x524] sm:$0xf0] }
  0x63   : > { %1824 = vmatpush.bf16.msrb.mxu2 %v2892_v48  ;;  %1799 = vmatpush.bf16.msrb.mxu0 %v2348_v58  ;;  %v2992_v48 = vor.u32 %v3514_v42, %v2991_v41  ;;  %v3215_v56 = vld [vmem:[%s5290_s1 + $0x708] sm:$0xf]  ;;  %v2448_v58 = vor.u32 %v3378_v50, %v2447_v49  ;;  %v2960_v60 = vor.u32 %v3506_v55, %v2959_v54  ;;  %v2801_v50 = vld [vmem:[%s5290_s1 + $0x3e8] sm:$0xf0] }
  0x64   : > { %v3570_v57 = vld [vmem:[%s5290_s1 + $0x724] sm:$0xf0]  ;;  %v3590_v55 = vld [vmem:[%s5290_s1 + $0x7cc] sm:$0xf] }
  0x65   : > { %1837 = vmatpush.bf16.msrb.mxu3 %v3148_v52  ;;  %1812 = vmatpush.bf16.msrb.mxu1 %v2604_v61  ;;  %v3248_v52 = vor.u32 %v3578_v45, %v3247_v44  ;;  %v2415_v61 = vld [vmem:[%s5290_s1 + $0xc8] sm:$0xf]  ;;  %v3216_v0 = vor.u32 %v3570_v57, %v3215_v56  ;;  %v3313_v56 = vld [vmem:[%s5290_s1 + $0x7e8] sm:$0xf0] }
  0x66   : > { %v2671_v63 = vld [vmem:[%s5290_s1 + $0x2c8] sm:$0xf] }
  0x67   : > { %1825 = vmatpush.bf16.msrb.mxu2 %v2860_v62  ;;  %1800 = vmatpush.bf16.msrb.mxu0 %v2316_v9  ;;  %v3370_v62 = vld [vmem:[%s5290_s1 + $0xe4] sm:$0xf0] }
  0x68   : > { %v3434_v1 = vld [vmem:[%s5290_s1 + $0x2e4] sm:$0xf0]  ;;  %v2416_v6 = vor.u32 %v3370_v62, %v2415_v61  ;;  %v3390_v61 = vld [vmem:[%s5290_s1 + $0x18c] sm:$0xf] }
  0x69   : > { %1838 = vmatpush.bf16.msrb.mxu3 %v3116_v2  ;;  %1813 = vmatpush.bf16.msrb.mxu1 %v2572_v13  ;;  %v2927_v2 = vld [vmem:[%s5290_s1 + $0x4c8] sm:$0xf]  ;;  %v2672_v7 = vor.u32 %v3434_v1, %v2671_v63  ;;  %v2513_v62 = vld [vmem:[%s5290_s1 + $0x1a8] sm:$0xf0] }
  0x6a   : > { %1801 = vmatmul.bf16.vlgmr.msrb.gmra.mxu0 %v3998_v37  ;;  %v3498_v3 = vld [vmem:[%s5290_s1 + $0x4e4] sm:$0xf0]  ;;  %v3454_v63 = vld [vmem:[%s5290_s1 + $0x38c] sm:$0xf] }
  0x6b   : > { %1826 = vmatpush.bf16.msrb.mxu2 %v2828_v14  ;;  %1845 = vmatpush.bf16.msra.mxu0 %v2544_v18  ;;  %v3183_v4 = vld [vmem:[%s5290_s1 + $0x6c8] sm:$0xf]  ;;  %v2928_v8 = vor.u32 %v3498_v3, %v2927_v2  ;;  %v2769_v1 = vld [vmem:[%s5290_s1 + $0x3a8] sm:$0xf0] }
  0x6c   : > { %1814 = vmatmul.bf16.vlgmr.msrb.gmra.mxu1 %v4011_v43  ;;  %v3562_v5 = vld [vmem:[%s5290_s1 + $0x6e4] sm:$0xf0]  ;;  %v3518_v2 = vld [vmem:[%s5290_s1 + $0x58c] sm:$0xf] }
  0x6d   : > { %1839 = vmatpush.bf16.msrb.mxu3 %v3084_v17  ;;  %1858 = vmatpush.bf16.msra.mxu1 %v2800_v19  ;;  %v2383_v9 = vld [vmem:[%s5290_s1 + $0x88] sm:$0xf]  ;;  %v3184_v12 = vor.u32 %v3562_v5, %v3183_v4  ;;  %v3025_v3 = vld [vmem:[%s5290_s1 + $0x5a8] sm:$0xf0] }
  0x6e   : > { %1827 = vmatmul.bf16.vlgmr.msrb.gmra.mxu2 %v3996_v36  ;;  %v3362_v10 = vld [vmem:[%s5290_s1 + $0xa4] sm:$0xf0]  ;;  %v3582_v4 = vld [vmem:[%s5290_s1 + $0x78c] sm:$0xf] }
  0x6f   : > { %1871 = vmatpush.bf16.msra.mxu2 %v3056_v20  ;;  %1846 = vmatpush.bf16.msra.mxu0 %v2512_v30  ;;  %v2639_v11 = vld [vmem:[%s5290_s1 + $0x288] sm:$0xf]  ;;  %v2384_v18 = vor.u32 %v3362_v10, %v2383_v9  ;;  %v3281_v5 = vld [vmem:[%s5290_s1 + $0x7a8] sm:$0xf0] }
  0x70   : > { %1840 = vmatmul.bf16.vlgmr.msrb.gmra.mxu3 %v4000_v38  ;;  %v3426_v13 = vld [vmem:[%s5290_s1 + $0x2a4] sm:$0xf0]  ;;  %v3382_v9 = vld [vmem:[%s5290_s1 + $0x14c] sm:$0xf] }
  0x71   : > { %1884 = vmatpush.bf16.msra.mxu3 %v3312_v24  ;;  %1859 = vmatpush.bf16.msra.mxu1 %v2768_v31  ;;  %v2895_v14 = vld [vmem:[%s5290_s1 + $0x488] sm:$0xf]  ;;  %v2640_v19 = vor.u32 %v3426_v13, %v2639_v11  ;;  %v2481_v10 = vld [vmem:[%s5290_s1 + $0x168] sm:$0xf0] }
  0x72   : > { %v3490_v15 = vld [vmem:[%s5290_s1 + $0x4a4] sm:$0xf0]  ;;  %v3446_v11 = vld [vmem:[%s5290_s1 + $0x34c] sm:$0xf] }
  0x73   : > { %1872 = vmatpush.bf16.msra.mxu2 %v3024_v32  ;;  %1847 = vmatpush.bf16.msra.mxu0 %v2480_v46  ;;  %v3151_v16 = vld [vmem:[%s5290_s1 + $0x688] sm:$0xf]  ;;  %v2896_v20 = vor.u32 %v3490_v15, %v2895_v14  ;;  %v3398_v46 = vld [vmem:[%s5290_s1 + $0x1cc] sm:$0xf] }
  0x74   : > { %v3554_v17 = vld [vmem:[%s5290_s1 + $0x6a4] sm:$0xf0]  ;;  %v2737_v13 = vld [vmem:[%s5290_s1 + $0x368] sm:$0xf0] }
  0x75   : > { %1885 = vmatpush.bf16.msra.mxu3 %v3280_v39  ;;  %1860 = vmatpush.bf16.msra.mxu1 %v2736_v47  ;;  %v2351_v21 = vld [vmem:[%s5290_s1 + $0x48] sm:$0xf]  ;;  %v3152_v24 = vor.u32 %v3554_v17, %v3151_v16  ;;  %v2545_v47 = vld [vmem:[%s5290_s1 + $0x1e8] sm:$0xf0] }
  0x76   : > { %v3354_v22 = vld [vmem:[%s5290_s1 + $0x64] sm:$0xf0]  ;;  %v3510_v14 = vld [vmem:[%s5290_s1 + $0x54c] sm:$0xf] }
  0x77   : > { %1873 = vmatpush.bf16.msra.mxu2 %v2992_v48  ;;  %1848 = vmatpush.bf16.msra.mxu0 %v2448_v58  ;;  %v2607_v23 = vld [vmem:[%s5290_s1 + $0x248] sm:$0xf]  ;;  %v2352_v30 = vor.u32 %v3354_v22, %v2351_v21  ;;  %v3462_v48 = vld [vmem:[%s5290_s1 + $0x3cc] sm:$0xf]  ;;  %v2548_v58 = vor.u32 %v3398_v46, %v2545_v47 }
  0x78   : > { %v3418_v25 = vld [vmem:[%s5290_s1 + $0x264] sm:$0xf0]  ;;  %v2993_v15 = vld [vmem:[%s5290_s1 + $0x568] sm:$0xf0] }
  0x79   : > { %1886 = vmatpush.bf16.msra.mxu3 %v3248_v52  ;;  %1861 = vmatpush.bf16.msra.mxu1 %v2704_v59  ;;  %v2863_v26 = vld [vmem:[%s5290_s1 + $0x448] sm:$0xf]  ;;  %v2608_v33 = vor.u32 %v3418_v25, %v2607_v23  ;;  %v3057_v52 = vld [vmem:[%s5290_s1 + $0x5e8] sm:$0xf0]  ;;  %v2804_v59 = vor.u32 %v3462_v48, %v2801_v50 }
  0x7a   : > { %v3482_v27 = vld [vmem:[%s5290_s1 + $0x464] sm:$0xf0]  ;;  %v3574_v16 = vld [vmem:[%s5290_s1 + $0x74c] sm:$0xf] }
  0x7b   : > { %1874 = vmatpush.bf16.msra.mxu2 %v2960_v60  ;;  %1849 = vmatpush.bf16.msra.mxu0 %v2416_v6  ;;  %v3119_v28 = vld [vmem:[%s5290_s1 + $0x648] sm:$0xf]  ;;  %v2864_v34 = vor.u32 %v3482_v27, %v2863_v26  ;;  %v3060_v60 = vor.u32 %v3526_v51, %v3057_v52  ;;  %v2516_v6 = vor.u32 %v3390_v61, %v2513_v62  ;;  %v3249_v17 = vld [vmem:[%s5290_s1 + $0x768] sm:$0xf0] }
  0x7c   : > { %v3546_v29 = vld [vmem:[%s5290_s1 + $0x664] sm:$0xf0]  ;;  %v3374_v21 = vld [vmem:[%s5290_s1 + $0x10c] sm:$0xf] }
  0x7d   : > { %1887 = vmatpush.bf16.msra.mxu3 %v3216_v0  ;;  %1862 = vmatpush.bf16.msra.mxu1 %v2672_v7  ;;  %v2319_v31 = vld [vmem:[%s5290_s1 + $0x8] sm:$0xf]  ;;  %v3120_v41 = vor.u32 %v3546_v29, %v3119_v28  ;;  %v3316_v0 = vor.u32 %v3590_v55, %v3313_v56  ;;  %v2772_v7 = vor.u32 %v3454_v63, %v2769_v1  ;;  %v2449_v22 = vld [vmem:[%s5290_s1 + $0x128] sm:$0xf0] }
  0x7e   : > { %v3346_v32 = vld [vmem:[%s5290_s1 + $0x24] sm:$0xf0]  ;;  %v3438_v23 = vld [vmem:[%s5290_s1 + $0x30c] sm:$0xf] }
  0x7f   : > { %1875 = vmatpush.bf16.msra.mxu2 %v2928_v8  ;;  %1850 = vmatpush.bf16.msra.mxu0 %v2384_v18  ;;  %v2575_v35 = vld [vmem:[%s5290_s1 + $0x208] sm:$0xf]  ;;  %v2320_v49 = vor.u32 %v3346_v32, %v2319_v31  ;;  %v3028_v8 = vor.u32 %v3518_v2, %v3025_v3  ;;  %v2484_v18 = vor.u32 %v3382_v9, %v2481_v10  ;;  %v2705_v25 = vld [vmem:[%s5290_s1 + $0x328] sm:$0xf0] }
  0x80   : > { %v3410_v39 = vld [vmem:[%s5290_s1 + $0x224] sm:$0xf0]  ;;  %v3502_v26 = vld [vmem:[%s5290_s1 + $0x50c] sm:$0xf]  ;;  %v2708_v31 = vor.u32 %v3438_v23, %v2705_v25  ;;  %v3063_v23 = vld [vmem:[%s5290_s1 + $0x5d0] sm:$0xf] }
  0x81   : > { %1888 = vmatpush.bf16.msra.mxu3 %v3184_v12  ;;  %1863 = vmatpush.bf16.msra.mxu1 %v2640_v19  ;;  %v2831_v40 = vld [vmem:[%s5290_s1 + $0x408] sm:$0xf]  ;;  %v2576_v53 = vor.u32 %v3410_v39, %v2575_v35  ;;  %v3284_v12 = vor.u32 %v3582_v4, %v3281_v5  ;;  %v2740_v19 = vor.u32 %v3446_v11, %v2737_v13  ;;  %v2961_v27 = vld [vmem:[%s5290_s1 + $0x528] sm:$0xf0] }
  0x82   : > { %v3474_v42 = vld [vmem:[%s5290_s1 + $0x424] sm:$0xf0]  ;;  %v3566_v28 = vld [vmem:[%s5290_s1 + $0x70c] sm:$0xf]  ;;  %v2964_v32 = vor.u32 %v3502_v26, %v2961_v27  ;;  %v3319_v27 = vld [vmem:[%s5290_s1 + $0x7d0] sm:$0xf] }
  0x83   : > { %1876 = vmatpush.bf16.msra.mxu2 %v2896_v20  ;;  %v3087_v44 = vld [vmem:[%s5290_s1 + $0x608] sm:$0xf]  ;;  %1851 = vmatpush.bf16.msra.mxu0 %v2352_v30  ;;  %v2832_v54 = vor.u32 %v3474_v42, %v2831_v40  ;;  %v2996_v20 = vor.u32 %v3510_v14, %v2993_v15  ;;  %v3217_v29 = vld [vmem:[%s5290_s1 + $0x728] sm:$0xf0]  ;;  %v2452_v30 = vor.u32 %v3374_v21, %v2449_v22  ;;  %v3467_v22 = vld [vmem:[%s5290_s1 + $0x3ec] sm:$0xf0] }
  0x84   : > { %v3538_v45 = vld [vmem:[%s5290_s1 + $0x624] sm:$0xf0]  ;;  %v3430_v35 = vld [vmem:[%s5290_s1 + $0x2cc] sm:$0xf]  ;;  %v3220_v39 = vor.u32 %v3566_v28, %v3217_v29  ;;  %v3595_v28 = vld [vmem:[%s5290_s1 + $0x7ec] sm:$0xf0] }
  0x85   : > { %1889 = vmatpush.bf16.msra.mxu3 %v3152_v24  ;;  %1864 = vmatpush.bf16.msra.mxu1 %v2608_v33  ;;  %v3088_v57 = vor.u32 %v3538_v45, %v3087_v44  ;;  %v3252_v24 = vor.u32 %v3574_v16, %v3249_v17  ;;  %v3366_v33 = vld [vmem:[%s5290_s1 + $0xcc] sm:$0xf] }
  0x86   : > { %v2673_v40 = vld [vmem:[%s5290_s1 + $0x2e8] sm:$0xf0] }
  0x87   : > { %1877 = vmatpush.bf16.msra.mxu2 %v2864_v34  ;;  %1852 = vmatpush.bf16.msra.mxu0 %v2320_v49  ;;  %v2417_v34 = vld [vmem:[%s5290_s1 + $0xe8] sm:$0xf0]  ;;  %v2676_v47 = vor.u32 %v3430_v35, %v2673_v40  ;;  %v2775_v35 = vld [vmem:[%s5290_s1 + $0x390] sm:$0xf] }
  0x88   : > { %v2929_v42 = vld [vmem:[%s5290_s1 + $0x4e8] sm:$0xf0]  ;;  %v2420_v46 = vor.u32 %v3366_v33, %v2417_v34  ;;  %v2519_v33 = vld [vmem:[%s5290_s1 + $0x190] sm:$0xf] }
  0x89   : > { %1890 = vmatpush.bf16.msra.mxu3 %v3120_v41  ;;  %1865 = vmatpush.bf16.msra.mxu1 %v2576_v53  ;;  %v3494_v41 = vld [vmem:[%s5290_s1 + $0x4cc] sm:$0xf]  ;;  %v3395_v34 = vld [vmem:[%s5290_s1 + $0x1ac] sm:$0xf0] }
  0x8a   : > { %1853 = vmatmul.bf16.vlgmr.msra.gmra.mxu0 %v3998_v37  ;;  %v3558_v44 = vld [vmem:[%s5290_s1 + $0x6cc] sm:$0xf]  ;;  %v2932_v48 = vor.u32 %v3494_v41, %v2929_v42  ;;  %v3459_v40 = vld [vmem:[%s5290_s1 + $0x3ac] sm:$0xf0] }
  0x8b   : > { %1878 = vmatpush.bf16.msra.mxu2 %v2832_v54  ;;  %1897 = vmatpush.bf16.msrb.mxu0 %v2548_v58  ;;  %v3185_v45 = vld [vmem:[%s5290_s1 + $0x6e8] sm:$0xf0]  ;;  %v3031_v41 = vld [vmem:[%s5290_s1 + $0x590] sm:$0xf] }
  0x8c   : > { %1866 = vmatmul.bf16.vlgmr.msra.gmra.mxu1 %v4011_v43  ;;  %v3358_v49 = vld [vmem:[%s5290_s1 + $0x8c] sm:$0xf]  ;;  %v3188_v52 = vor.u32 %v3558_v44, %v3185_v45  ;;  %v3523_v42 = vld [vmem:[%s5290_s1 + $0x5ac] sm:$0xf0] }
  0x8d   : > { %1891 = vmatpush.bf16.msra.mxu3 %v3088_v57  ;;  %1910 = vmatpush.bf16.msrb.mxu1 %v2804_v59  ;;  %v2385_v50 = vld [vmem:[%s5290_s1 + $0xa8] sm:$0xf0]  ;;  %v3287_v44 = vld [vmem:[%s5290_s1 + $0x790] sm:$0xf] }
  0x8e   : > { %1879 = vmatmul.bf16.vlgmr.msra.gmra.mxu2 %v3996_v36  ;;  %v3422_v51 = vld [vmem:[%s5290_s1 + $0x28c] sm:$0xf]  ;;  %v2388_v58 = vor.u32 %v3358_v49, %v2385_v50  ;;  %v3587_v45 = vld [vmem:[%s5290_s1 + $0x7ac] sm:$0xf0] }
  0x8f   : > { %1923 = vmatpush.bf16.msrb.mxu2 %v3060_v60  ;;  %1898 = vmatpush.bf16.msrb.mxu0 %v2516_v6  ;;  %v2641_v53 = vld [vmem:[%s5290_s1 + $0x2a8] sm:$0xf0]  ;;  %v2487_v49 = vld [vmem:[%s5290_s1 + $0x150] sm:$0xf] }
  0x90   : > { %1892 = vmatmul.bf16.vlgmr.msra.gmra.mxu3 %v4000_v38  ;;  %v3486_v54 = vld [vmem:[%s5290_s1 + $0x48c] sm:$0xf]  ;;  %v2644_v59 = vor.u32 %v3422_v51, %v2641_v53  ;;  %v3387_v50 = vld [vmem:[%s5290_s1 + $0x16c] sm:$0xf0] }
  0x91   : > { %1936 = vmatpush.bf16.msrb.mxu3 %v3316_v0  ;;  %1911 = vmatpush.bf16.msrb.mxu1 %v2772_v7  ;;  %v2897_v55 = vld [vmem:[%s5290_s1 + $0x4a8] sm:$0xf0]  ;;  %v2743_v51 = vld [vmem:[%s5290_s1 + $0x350] sm:$0xf] }
  0x92   : > { %v3550_v56 = vld [vmem:[%s5290_s1 + $0x68c] sm:$0xf]  ;;  %v2900_v60 = vor.u32 %v3486_v54, %v2897_v55  ;;  %v3451_v53 = vld [vmem:[%s5290_s1 + $0x36c] sm:$0xf0] }
  0x93   : > { %1924 = vmatpush.bf16.msrb.mxu2 %v3028_v8  ;;  %1899 = vmatpush.bf16.msrb.mxu0 %v2484_v18  ;;  %v3153_v57 = vld [vmem:[%s5290_s1 + $0x6a8] sm:$0xf0]  ;;  %v2551_v18 = vld [vmem:[%s5290_s1 + $0x1d0] sm:$0xf] }
  0x94   : > { %v3350_v61 = vld [vmem:[%s5290_s1 + $0x4c] sm:$0xf]  ;;  %v3156_v0 = vor.u32 %v3550_v56, %v3153_v57  ;;  %v2999_v54 = vld [vmem:[%s5290_s1 + $0x550] sm:$0xf] }
  0x95   : > { %1937 = vmatpush.bf16.msrb.mxu3 %v3284_v12  ;;  %1912 = vmatpush.bf16.msrb.mxu1 %v2740_v19  ;;  %v2353_v62 = vld [vmem:[%s5290_s1 + $0x68] sm:$0xf0]  ;;  %v3403_v19 = vld [vmem:[%s5290_s1 + $0x1ec] sm:$0xf0] }
  0x96   : > { %v3414_v63 = vld [vmem:[%s5290_s1 + $0x24c] sm:$0xf]  ;;  %v2356_v6 = vor.u32 %v3350_v61, %v2353_v62  ;;  %v3515_v55 = vld [vmem:[%s5290_s1 + $0x56c] sm:$0xf0] }
  0x97   : > { %1925 = vmatpush.bf16.msrb.mxu2 %v2996_v20  ;;  %1900 = vmatpush.bf16.msrb.mxu0 %v2452_v30  ;;  %v2609_v1 = vld [vmem:[%s5290_s1 + $0x268] sm:$0xf0]  ;;  %v2807_v20 = vld [vmem:[%s5290_s1 + $0x3d0] sm:$0xf]  ;;  %v2552_v30 = vor.u32 %v3403_v19, %v2551_v18 }
  0x98   : > { %v3478_v2 = vld [vmem:[%s5290_s1 + $0x44c] sm:$0xf]  ;;  %v2612_v9 = vor.u32 %v3414_v63, %v2609_v1  ;;  %v3255_v56 = vld [vmem:[%s5290_s1 + $0x750] sm:$0xf] }
  0x99   : > { %1938 = vmatpush.bf16.msrb.mxu3 %v3252_v24  ;;  %1913 = vmatpush.bf16.msrb.mxu1 %v2708_v31  ;;  %v2865_v3 = vld [vmem:[%s5290_s1 + $0x468] sm:$0xf0]  ;;  %v3531_v24 = vld [vmem:[%s5290_s1 + $0x5ec] sm:$0xf0]  ;;  %v2808_v31 = vor.u32 %v3467_v22, %v2807_v20 }
  0x9a   : > { %v3542_v4 = vld [vmem:[%s5290_s1 + $0x64c] sm:$0xf]  ;;  %v2868_v10 = vor.u32 %v3478_v2, %v2865_v3  ;;  %v3579_v57 = vld [vmem:[%s5290_s1 + $0x76c] sm:$0xf0] }
  0x9b   : > { %1926 = vmatpush.bf16.msrb.mxu2 %v2964_v32  ;;  %1901 = vmatpush.bf16.msrb.mxu0 %v2420_v46  ;;  %v3121_v5 = vld [vmem:[%s5290_s1 + $0x668] sm:$0xf0]  ;;  %v3064_v32 = vor.u32 %v3531_v24, %v3063_v23  ;;  %v2520_v46 = vor.u32 %v3395_v34, %v2519_v33  ;;  %v2455_v61 = vld [vmem:[%s5290_s1 + $0x110] sm:$0xf] }
  0x9c   : > { %v3342_v7 = vld [vmem:[%s5290_s1 + $0xc] sm:$0xf]  ;;  %v3124_v14 = vor.u32 %v3542_v4, %v3121_v5  ;;  %v3379_v62 = vld [vmem:[%s5290_s1 + $0x12c] sm:$0xf0] }
  0x9d   : > { %1939 = vmatpush.bf16.msrb.mxu3 %v3220_v39  ;;  %1914 = vmatpush.bf16.msrb.mxu1 %v2676_v47  ;;  %v2321_v8 = vld [vmem:[%s5290_s1 + $0x28] sm:$0xf0]  ;;  %v3320_v39 = vor.u32 %v3595_v28, %v3319_v27  ;;  %v2776_v47 = vor.u32 %v3459_v40, %v2775_v35  ;;  %v2711_v63 = vld [vmem:[%s5290_s1 + $0x310] sm:$0xf] }
  0x9e   : > { %v3406_v11 = vld [vmem:[%s5290_s1 + $0x20c] sm:$0xf]  ;;  %v2324_v21 = vor.u32 %v3342_v7, %v2321_v8  ;;  %v3443_v1 = vld [vmem:[%s5290_s1 + $0x32c] sm:$0xf0] }
  0x9f   : > { %1927 = vmatpush.bf16.msrb.mxu2 %v2932_v48  ;;  %1902 = vmatpush.bf16.msrb.mxu0 %v2388_v58  ;;  %v2577_v12 = vld [vmem:[%s5290_s1 + $0x228] sm:$0xf0]  ;;  %v3032_v48 = vor.u32 %v3523_v42, %v3031_v41  ;;  %v2488_v58 = vor.u32 %v3387_v50, %v2487_v49  ;;  %v2967_v2 = vld [vmem:[%s5290_s1 + $0x510] sm:$0xf]  ;;  %v2712_v7 = vor.u32 %v3443_v1, %v2711_v63  ;;  %v3527_v63 = vld [vmem:[%s5290_s1 + $0x5d4] sm:$0xf] }
  0xa0   : > { %v3470_v13 = vld [vmem:[%s5290_s1 + $0x40c] sm:$0xf]  ;;  %v2580_v25 = vor.u32 %v3406_v11, %v2577_v12  ;;  %v3507_v3 = vld [vmem:[%s5290_s1 + $0x52c] sm:$0xf0] }
  0xa1   : > { %1940 = vmatpush.bf16.msrb.mxu3 %v3188_v52  ;;  %1915 = vmatpush.bf16.msrb.mxu1 %v2644_v59  ;;  %v2833_v15 = vld [vmem:[%s5290_s1 + $0x428] sm:$0xf0]  ;;  %v3288_v52 = vor.u32 %v3587_v45, %v3287_v44  ;;  %v2744_v59 = vor.u32 %v3451_v53, %v2743_v51  ;;  %v3223_v4 = vld [vmem:[%s5290_s1 + $0x710] sm:$0xf]  ;;  %v2968_v8 = vor.u32 %v3507_v3, %v2967_v2  ;;  %v3591_v3 = vld [vmem:[%s5290_s1 + $0x7d4] sm:$0xf] }
  0xa2   : > { %v3534_v16 = vld [vmem:[%s5290_s1 + $0x60c] sm:$0xf]  ;;  %v2836_v26 = vor.u32 %v3470_v13, %v2833_v15  ;;  %v3571_v5 = vld [vmem:[%s5290_s1 + $0x72c] sm:$0xf0] }
  0xa3   : > { %1928 = vmatpush.bf16.msrb.mxu2 %v2900_v60  ;;  %v3089_v17 = vld [vmem:[%s5290_s1 + $0x628] sm:$0xf0]  ;;  %1903 = vmatpush.bf16.msrb.mxu0 %v2356_v6  ;;  %v3000_v60 = vor.u32 %v3515_v55, %v2999_v54  ;;  %v2456_v6 = vor.u32 %v3379_v62, %v2455_v61  ;;  %v2679_v11 = vld [vmem:[%s5290_s1 + $0x2d0] sm:$0xf]  ;;  %v3224_v12 = vor.u32 %v3571_v5, %v3223_v4  ;;  %v2809_v62 = vld [vmem:[%s5290_s1 + $0x3f0] sm:$0xf0] }
  0xa4   : > { %v3092_v29 = vor.u32 %v3534_v16, %v3089_v17  ;;  %v3435_v13 = vld [vmem:[%s5290_s1 + $0x2ec] sm:$0xf0]  ;;  %v3321_v4 = vld [vmem:[%s5290_s1 + $0x7f0] sm:$0xf0] }
  0xa5   : > { %1941 = vmatpush.bf16.msrb.mxu3 %v3156_v0  ;;  %1916 = vmatpush.bf16.msrb.mxu1 %v2612_v9  ;;  %v3256_v0 = vor.u32 %v3579_v57, %v3255_v56  ;;  %v2423_v9 = vld [vmem:[%s5290_s1 + $0xd0] sm:$0xf]  ;;  %v2680_v19 = vor.u32 %v3435_v13, %v2679_v11  ;;  %v3455_v11 = vld [vmem:[%s5290_s1 + $0x394] sm:$0xf] }
  0xa6   : > { %v3499_v15 = vld [vmem:[%s5290_s1 + $0x4ec] sm:$0xf0]  ;;  %v2777_v13 = vld [vmem:[%s5290_s1 + $0x3b0] sm:$0xf0] }
  0xa7   : > { %1929 = vmatpush.bf16.msrb.mxu2 %v2868_v10  ;;  %1904 = vmatpush.bf16.msrb.mxu0 %v2324_v21  ;;  %v3371_v10 = vld [vmem:[%s5290_s1 + $0xec] sm:$0xf0] }
  0xa8   : > { %v3191_v16 = vld [vmem:[%s5290_s1 + $0x6d0] sm:$0xf]  ;;  %v2424_v18 = vor.u32 %v3371_v10, %v2423_v9  ;;  %v3391_v9 = vld [vmem:[%s5290_s1 + $0x194] sm:$0xf] }
  0xa9   : > { %1942 = vmatpush.bf16.msrb.mxu3 %v3124_v14  ;;  %1917 = vmatpush.bf16.msrb.mxu1 %v2580_v25  ;;  %v2935_v14 = vld [vmem:[%s5290_s1 + $0x4d0] sm:$0xf]  ;;  %v2521_v10 = vld [vmem:[%s5290_s1 + $0x1b0] sm:$0xf0] }
  0xaa   : > { %1905 = vmatmul.bf16.vlgmr.msrb.gmra.mxu0 %v3998_v37  ;;  %v3563_v17 = vld [vmem:[%s5290_s1 + $0x6ec] sm:$0xf0]  ;;  %v2936_v20 = vor.u32 %v3499_v15, %v2935_v14  ;;  %v3519_v14 = vld [vmem:[%s5290_s1 + $0x594] sm:$0xf] }
  0xab   : > { %1930 = vmatpush.bf16.msrb.mxu2 %v2836_v26  ;;  %1949 = vmatpush.bf16.msra.mxu0 %v2552_v30  ;;  %v2391_v21 = vld [vmem:[%s5290_s1 + $0x90] sm:$0xf]  ;;  %v3192_v24 = vor.u32 %v3563_v17, %v3191_v16  ;;  %v3033_v15 = vld [vmem:[%s5290_s1 + $0x5b0] sm:$0xf0] }
  0xac   : > { %1918 = vmatmul.bf16.vlgmr.msrb.gmra.mxu1 %v4011_v43  ;;  %v3363_v22 = vld [vmem:[%s5290_s1 + $0xac] sm:$0xf0]  ;;  %v3583_v16 = vld [vmem:[%s5290_s1 + $0x794] sm:$0xf] }
  0xad   : > { %1943 = vmatpush.bf16.msrb.mxu3 %v3092_v29  ;;  %1962 = vmatpush.bf16.msra.mxu1 %v2808_v31  ;;  %v2647_v23 = vld [vmem:[%s5290_s1 + $0x290] sm:$0xf]  ;;  %v2392_v30 = vor.u32 %v3363_v22, %v2391_v21  ;;  %v3289_v17 = vld [vmem:[%s5290_s1 + $0x7b0] sm:$0xf0] }
  0xae   : > { %1931 = vmatmul.bf16.vlgmr.msrb.gmra.mxu2 %v3996_v36  ;;  %v3427_v25 = vld [vmem:[%s5290_s1 + $0x2ac] sm:$0xf0]  ;;  %v3383_v21 = vld [vmem:[%s5290_s1 + $0x154] sm:$0xf] }
  0xaf   : > { %1975 = vmatpush.bf16.msra.mxu2 %v3064_v32  ;;  %1950 = vmatpush.bf16.msra.mxu0 %v2520_v46  ;;  %v2903_v26 = vld [vmem:[%s5290_s1 + $0x490] sm:$0xf]  ;;  %v2648_v31 = vor.u32 %v3427_v25, %v2647_v23  ;;  %v2489_v22 = vld [vmem:[%s5290_s1 + $0x170] sm:$0xf0] }
  0xb0   : > { %1944 = vmatmul.bf16.vlgmr.msrb.gmra.mxu3 %v4000_v38  ;;  %v3491_v27 = vld [vmem:[%s5290_s1 + $0x4ac] sm:$0xf0]  ;;  %v3447_v23 = vld [vmem:[%s5290_s1 + $0x354] sm:$0xf] }
  0xb1   : > { %1988 = vmatpush.bf16.msra.mxu3 %v3320_v39  ;;  %1963 = vmatpush.bf16.msra.mxu1 %v2776_v47  ;;  %v3159_v28 = vld [vmem:[%s5290_s1 + $0x690] sm:$0xf]  ;;  %v2904_v32 = vor.u32 %v3491_v27, %v2903_v26  ;;  %v2745_v25 = vld [vmem:[%s5290_s1 + $0x370] sm:$0xf0] }
  0xb2   : > { %v3555_v29 = vld [vmem:[%s5290_s1 + $0x6ac] sm:$0xf0]  ;;  %v3511_v26 = vld [vmem:[%s5290_s1 + $0x554] sm:$0xf] }
  0xb3   : > { %1976 = vmatpush.bf16.msra.mxu2 %v3032_v48  ;;  %1951 = vmatpush.bf16.msra.mxu0 %v2488_v58  ;;  %v2359_v33 = vld [vmem:[%s5290_s1 + $0x50] sm:$0xf]  ;;  %v3160_v39 = vor.u32 %v3555_v29, %v3159_v28  ;;  %v3399_v58 = vld [vmem:[%s5290_s1 + $0x1d4] sm:$0xf] }
  0xb4   : > { %v3355_v34 = vld [vmem:[%s5290_s1 + $0x6c] sm:$0xf0]  ;;  %v3001_v27 = vld [vmem:[%s5290_s1 + $0x570] sm:$0xf0] }
  0xb5   : > { %1989 = vmatpush.bf16.msra.mxu3 %v3288_v52  ;;  %1964 = vmatpush.bf16.msra.mxu1 %v2744_v59  ;;  %v2615_v35 = vld [vmem:[%s5290_s1 + $0x250] sm:$0xf]  ;;  %v2360_v46 = vor.u32 %v3355_v34, %v2359_v33  ;;  %v2553_v59 = vld [vmem:[%s5290_s1 + $0x1f0] sm:$0xf0] }
  0xb6   : > { %v3419_v40 = vld [vmem:[%s5290_s1 + $0x26c] sm:$0xf0]  ;;  %v3575_v28 = vld [vmem:[%s5290_s1 + $0x754] sm:$0xf] }
  0xb7   : > { %1977 = vmatpush.bf16.msra.mxu2 %v3000_v60  ;;  %1952 = vmatpush.bf16.msra.mxu0 %v2456_v6  ;;  %v2871_v41 = vld [vmem:[%s5290_s1 + $0x450] sm:$0xf]  ;;  %v2616_v49 = vor.u32 %v3419_v40, %v2615_v35  ;;  %v3463_v60 = vld [vmem:[%s5290_s1 + $0x3d4] sm:$0xf]  ;;  %v2556_v6 = vor.u32 %v3399_v58, %v2553_v59 }
  0xb8   : > { %v3483_v42 = vld [vmem:[%s5290_s1 + $0x46c] sm:$0xf0]  ;;  %v3257_v29 = vld [vmem:[%s5290_s1 + $0x770] sm:$0xf0] }
  0xb9   : > { %1990 = vmatpush.bf16.msra.mxu3 %v3256_v0  ;;  %1965 = vmatpush.bf16.msra.mxu1 %v2712_v7  ;;  %v3127_v44 = vld [vmem:[%s5290_s1 + $0x650] sm:$0xf]  ;;  %v2872_v50 = vor.u32 %v3483_v42, %v2871_v41  ;;  %v3065_v0 = vld [vmem:[%s5290_s1 + $0x5f0] sm:$0xf0]  ;;  %v2812_v7 = vor.u32 %v3463_v60, %v2809_v62 }
  0xba   : > { %v3547_v45 = vld [vmem:[%s5290_s1 + $0x66c] sm:$0xf0]  ;;  %v3375_v33 = vld [vmem:[%s5290_s1 + $0x114] sm:$0xf] }
  0xbb   : > { %1978 = vmatpush.bf16.msra.mxu2 %v2968_v8  ;;  %1953 = vmatpush.bf16.msra.mxu0 %v2424_v18  ;;  %v2327_v47 = vld [vmem:[%s5290_s1 + $0x10] sm:$0xf]  ;;  %v3128_v54 = vor.u32 %v3547_v45, %v3127_v44  ;;  %v3068_v8 = vor.u32 %v3527_v63, %v3065_v0  ;;  %v2524_v18 = vor.u32 %v3391_v9, %v2521_v10  ;;  %v2457_v34 = vld [vmem:[%s5290_s1 + $0x130] sm:$0xf0] }
  0xbc   : > { %v3347_v48 = vld [vmem:[%s5290_s1 + $0x2c] sm:$0xf0]  ;;  %v3439_v35 = vld [vmem:[%s5290_s1 + $0x314] sm:$0xf] }
  0xbd   : > { %1991 = vmatpush.bf16.msra.mxu3 %v3224_v12  ;;  %1966 = vmatpush.bf16.msra.mxu1 %v2680_v19  ;;  %v2583_v51 = vld [vmem:[%s5290_s1 + $0x210] sm:$0xf]  ;;  %v2328_v61 = vor.u32 %v3347_v48, %v2327_v47  ;;  %v3324_v12 = vor.u32 %v3591_v3, %v3321_v4  ;;  %v2780_v19 = vor.u32 %v3455_v11, %v2777_v13  ;;  %v2713_v40 = vld [vmem:[%s5290_s1 + $0x330] sm:$0xf0]  ;;  %v4804_v4 = vld [vmem:[%s5291_s2] sm:$0xff] }
  0xbe   : > { %v3411_v52 = vld [vmem:[%s5290_s1 + $0x22c] sm:$0xf0]  ;;  %v3503_v41 = vld [vmem:[%s5290_s1 + $0x514] sm:$0xf]  ;;  %v2716_v47 = vor.u32 %v3439_v35, %v2713_v40  ;;  %v431_v13 = vperm.slane %v4804_v4, 0 }
  0xbf   : > { %1979 = vmatpush.bf16.msra.mxu2 %v2936_v20  ;;  %1954 = vmatpush.bf16.msra.mxu0 %v2392_v30  ;;  %v2839_v53 = vld [vmem:[%s5290_s1 + $0x410] sm:$0xf]  ;;  %v2584_v1 = vor.u32 %v3411_v52, %v2583_v51  ;;  %v3036_v20 = vor.u32 %v3519_v14, %v3033_v15  ;;  %v2492_v30 = vor.u32 %v3383_v21, %v2489_v22  ;;  %v2969_v42 = vld [vmem:[%s5290_s1 + $0x530] sm:$0xf0]  ;;  %v3404_v35 = vld [vmem:[%s5290_s1 + $0x1f4] sm:$0xf0] }
  0xc0   : > { %v3475_v55 = vld [vmem:[%s5290_s1 + $0x42c] sm:$0xf0]  ;;  %v3567_v44 = vld [vmem:[%s5290_s1 + $0x714] sm:$0xf]  ;;  %v2972_v48 = vor.u32 %v3503_v41, %v2969_v42  ;;  %v3468_v42 = vld [vmem:[%s5290_s1 + $0x3f4] sm:$0xf0] }
  0xc1   : > { %1992 = vmatpush.bf16.msra.mxu3 %v3192_v24  ;;  %1967 = vmatpush.bf16.msra.mxu1 %v2648_v31  ;;  %v3095_v56 = vld [vmem:[%s5290_s1 + $0x610] sm:$0xf]  ;;  %v2840_v2 = vor.u32 %v3475_v55, %v2839_v53  ;;  %v3292_v24 = vor.u32 %v3583_v16, %v3289_v17  ;;  %v2748_v31 = vor.u32 %v3447_v23, %v2745_v25  ;;  %v3225_v45 = vld [vmem:[%s5290_s1 + $0x730] sm:$0xf0] }
  0xc2   : > { %v3539_v57 = vld [vmem:[%s5290_s1 + $0x62c] sm:$0xf0]  ;;  %v3431_v51 = vld [vmem:[%s5290_s1 + $0x2d4] sm:$0xf]  ;;  %v3228_v52 = vor.u32 %v3567_v44, %v3225_v45  ;;  %v3071_v44 = vld [vmem:[%s5290_s1 + $0x5d8] sm:$0xf] }
  0xc3   : > { %1980 = vmatpush.bf16.msra.mxu2 %v2904_v32  ;;  %1955 = vmatpush.bf16.msra.mxu0 %v2360_v46  ;;  %v3096_v5 = vor.u32 %v3539_v57, %v3095_v56  ;;  %v3004_v32 = vor.u32 %v3511_v26, %v3001_v27  ;;  %v2460_v46 = vor.u32 %v3375_v33, %v2457_v34  ;;  %v2681_v53 = vld [vmem:[%s5290_s1 + $0x2f0] sm:$0xf0]  ;;  %v2559_v34 = vld [vmem:[%s5290_s1 + $0x1d8] sm:$0xf] }
  0xc4   : > { %v2937_v55 = vld [vmem:[%s5290_s1 + $0x4f0] sm:$0xf0]  ;;  %v2684_v60 = vor.u32 %v3431_v51, %v2681_v53  ;;  %v3532_v45 = vld [vmem:[%s5290_s1 + $0x5f4] sm:$0xf0] }
  0xc5   : > { %1993 = vmatpush.bf16.msra.mxu3 %v3160_v39  ;;  %1968 = vmatpush.bf16.msra.mxu1 %v2616_v49  ;;  %v3260_v39 = vor.u32 %v3575_v28, %v3257_v29  ;;  %v3367_v49 = vld [vmem:[%s5290_s1 + $0xd4] sm:$0xf] }
  0xc6   : > { %v3559_v56 = vld [vmem:[%s5290_s1 + $0x6d4] sm:$0xf] }
  0xc7   : > { %1981 = vmatpush.bf16.msra.mxu2 %v2872_v50  ;;  %1956 = vmatpush.bf16.msra.mxu0 %v2328_v61  ;;  %v2425_v50 = vld [vmem:[%s5290_s1 + $0xf0] sm:$0xf0] }
  0xc8   : > { %v3193_v57 = vld [vmem:[%s5290_s1 + $0x6f0] sm:$0xf0]  ;;  %v2428_v58 = vor.u32 %v3367_v49, %v2425_v50  ;;  %v3327_v49 = vld [vmem:[%s5290_s1 + $0x7d8] sm:$0xf] }
  0xc9   : > { %1994 = vmatpush.bf16.msra.mxu3 %v3128_v54  ;;  %1969 = vmatpush.bf16.msra.mxu1 %v2584_v1  ;;  %v3495_v54 = vld [vmem:[%s5290_s1 + $0x4d4] sm:$0xf]  ;;  %v3196_v1 = vor.u32 %v3559_v56, %v3193_v57  ;;  %v3596_v50 = vld [vmem:[%s5290_s1 + $0x7f4] sm:$0xf0] }
  0xca   : > { %1957 = vmatmul.bf16.vlgmr.msra.gmra.mxu0 %v3998_v37  ;;  %v3359_v59 = vld [vmem:[%s5290_s1 + $0x94] sm:$0xf]  ;;  %v2940_v61 = vor.u32 %v3495_v54, %v2937_v55  ;;  %v3072_v55 = vor.u32 %v3532_v45, %v3071_v44  ;;  %v2527_v56 = vld [vmem:[%s5290_s1 + $0x198] sm:$0xf] }
  0xcb   : > { %1982 = vmatpush.bf16.msra.mxu2 %v2840_v2  ;;  %2001 = vmatpush.bf16.msrb.mxu0 %v2556_v6  ;;  %v2393_v62 = vld [vmem:[%s5290_s1 + $0xb0] sm:$0xf0]  ;;  %v3396_v57 = vld [vmem:[%s5290_s1 + $0x1b4] sm:$0xf0] }
  0xcc   : > { %1970 = vmatmul.bf16.vlgmr.msra.gmra.mxu1 %v4011_v43  ;;  %v3423_v63 = vld [vmem:[%s5290_s1 + $0x294] sm:$0xf]  ;;  %v2687_v44 = vld [vmem:[%s5290_s1 + $0x2d8] sm:$0xf] }
  0xcd   : > { %1995 = vmatpush.bf16.msra.mxu3 %v3096_v5  ;;  %2014 = vmatpush.bf16.msrb.mxu1 %v2812_v7  ;;  %v2649_v0 = vld [vmem:[%s5290_s1 + $0x2b0] sm:$0xf0]  ;;  %v2396_v7 = vor.u32 %v3359_v59, %v2393_v62  ;;  %v1750_v23 = vpop.f32.mrf.mxu0  ;;  %v3460_v62 = vld [vmem:[%s5290_s1 + $0x3b4] sm:$0xf0] }
  0xce   : > { %1983 = vmatmul.bf16.vlgmr.msra.gmra.mxu2 %v3996_v36  ;;  %v3487_v2 = vld [vmem:[%s5290_s1 + $0x494] sm:$0xf]  ;;  %v2652_v9 = vor.u32 %v3423_v63, %v2649_v0  ;;  %v1751_v29 = vadd.f32 %v1750_v23, %v431_v13  ;;  %v3039_v63 = vld [vmem:[%s5290_s1 + $0x598] sm:$0xf] }
  0xcf   : > { %2027 = vmatpush.bf16.msrb.mxu2 %v3068_v8  ;;  %2002 = vmatpush.bf16.msrb.mxu0 %v2524_v18  ;;  %v2905_v3 = vld [vmem:[%s5290_s1 + $0x4b0] sm:$0xf0]  ;;  %v1763_v40 = vpop.f32.mrf.mxu1  ;;  %v3524_v0 = vld [vmem:[%s5290_s1 + $0x5b4] sm:$0xf0] }
  0xd0   : > { %1996 = vmatmul.bf16.vlgmr.msra.gmra.mxu3 %v4000_v38  ;;  %v3551_v5 = vld [vmem:[%s5290_s1 + $0x694] sm:$0xf]  ;;  %v2908_v10 = vor.u32 %v3487_v2, %v2905_v3  ;;  %v3295_v2 = vld [vmem:[%s5290_s1 + $0x798] sm:$0xf] }
  0xd1   : > { %2040 = vmatpush.bf16.msrb.mxu3 %v3324_v12  ;;  %2015 = vmatpush.bf16.msrb.mxu1 %v2780_v19  ;;  %v3161_v6 = vld [vmem:[%s5290_s1 + $0x6b0] sm:$0xf0]  ;;  %v3588_v3 = vld [vmem:[%s5290_s1 + $0x7b4] sm:$0xf0] }
  0xd2   : > { %v3351_v8 = vld [vmem:[%s5290_s1 + $0x54] sm:$0xf]  ;;  %v3164_v14 = vor.u32 %v3551_v5, %v3161_v6  ;;  %v2528_v6 = vor.u32 %v3396_v57, %v2527_v56  ;;  %v3296_v13 = vor.u32 %v3588_v3, %v3295_v2  ;;  %v2399_v57 = vld [vmem:[%s5290_s1 + $0x98] sm:$0xf] }
  0xd3   : > { %2028 = vmatpush.bf16.msrb.mxu2 %v3036_v20  ;;  %2003 = vmatpush.bf16.msrb.mxu0 %v2492_v30  ;;  %v2361_v11 = vld [vmem:[%s5290_s1 + $0x70] sm:$0xf0]  ;;  %v1776_v53 = vpop.f32.mrf.mxu2  ;;  %v3167_v3 = vld [vmem:[%s5290_s1 + $0x698] sm:$0xf] }
  0xd4   : > { %v3415_v12 = vld [vmem:[%s5290_s1 + $0x254] sm:$0xf]  ;;  %v2364_v20 = vor.u32 %v3351_v8, %v2361_v11  ;;  %v3040_v8 = vor.u32 %v3524_v0, %v3039_v63  ;;  %v2751_v11 = vld [vmem:[%s5290_s1 + $0x358] sm:$0xf] }
  0xd5   : > { %2041 = vmatpush.bf16.msrb.mxu3 %v3292_v24  ;;  %2016 = vmatpush.bf16.msrb.mxu1 %v2748_v31  ;;  %v2617_v15 = vld [vmem:[%s5290_s1 + $0x270] sm:$0xf0]  ;;  %v2911_v63 = vld [vmem:[%s5290_s1 + $0x498] sm:$0xf] }
  0xd6   : > { %v3479_v16 = vld [vmem:[%s5290_s1 + $0x454] sm:$0xf]  ;;  %v2620_v24 = vor.u32 %v3415_v12, %v2617_v15  ;;  %v3007_v15 = vld [vmem:[%s5290_s1 + $0x558] sm:$0xf] }
  0xd7   : > { %2029 = vmatpush.bf16.msrb.mxu2 %v3004_v32  ;;  %2004 = vmatpush.bf16.msrb.mxu0 %v2460_v46  ;;  %v2873_v17 = vld [vmem:[%s5290_s1 + $0x470] sm:$0xf0]  ;;  %v1764_v46 = vadd.f32 %v1763_v40, %v1751_v29  ;;  %v1765_v12 = vpop.f32.mrf.mxu1  ;;  %v3444_v29 = vld [vmem:[%s5290_s1 + $0x334] sm:$0xf0] }
  0xd8   : > { %v3543_v18 = vld [vmem:[%s5290_s1 + $0x654] sm:$0xf]  ;;  %v2876_v25 = vor.u32 %v3479_v16, %v2873_v17  ;;  %v3516_v16 = vld [vmem:[%s5290_s1 + $0x574] sm:$0xf0] }
  0xd9   : > { %2042 = vmatpush.bf16.msrb.mxu3 %v3260_v39  ;;  %2017 = vmatpush.bf16.msrb.mxu1 %v2716_v47  ;;  %v3129_v19 = vld [vmem:[%s5290_s1 + $0x670] sm:$0xf0]  ;;  %v2815_v39 = vld [vmem:[%s5290_s1 + $0x3d8] sm:$0xf]  ;;  %v1777_v59 = vadd.f32 %v1776_v53, %v1764_v46  ;;  %v3008_v23 = vor.u32 %v3516_v16, %v3007_v15 }
  0xda   : > { %v3343_v21 = vld [vmem:[%s5290_s1 + $0x14] sm:$0xf]  ;;  %v3132_v30 = vor.u32 %v3543_v18, %v3129_v19  ;;  %v2816_v54 = vor.u32 %v3468_v42, %v2815_v39  ;;  %v3263_v17 = vld [vmem:[%s5290_s1 + $0x758] sm:$0xf] }
  0xdb   : > { %2030 = vmatpush.bf16.msrb.mxu2 %v2972_v48  ;;  %2005 = vmatpush.bf16.msrb.mxu0 %v2428_v58  ;;  %v2329_v22 = vld [vmem:[%s5290_s1 + $0x30] sm:$0xf0]  ;;  %v2783_v58 = vld [vmem:[%s5290_s1 + $0x398] sm:$0xf] }
  0xdc   : > { %v3407_v26 = vld [vmem:[%s5290_s1 + $0x214] sm:$0xf]  ;;  %v2332_v41 = vor.u32 %v3343_v21, %v2329_v22  ;;  %v3580_v18 = vld [vmem:[%s5290_s1 + $0x774] sm:$0xf0]  ;;  %v1778_v21 = vpop.f32.mrf.mxu2 }
  0xdd   : > { %2043 = vmatpush.bf16.msrb.mxu3 %v3228_v52  ;;  %2018 = vmatpush.bf16.msrb.mxu1 %v2684_v60  ;;  %v2585_v27 = vld [vmem:[%s5290_s1 + $0x230] sm:$0xf0]  ;;  %v2560_v52 = vor.u32 %v3404_v35, %v2559_v34  ;;  %v1789_v60 = vpop.f32.mrf.mxu3  ;;  %v3372_v42 = vld [vmem:[%s5290_s1 + $0xf4] sm:$0xf0] }
  0xde   : > { %v3471_v28 = vld [vmem:[%s5290_s1 + $0x414] sm:$0xf]  ;;  %v2588_v47 = vor.u32 %v3407_v26, %v2585_v27  ;;  %v4909_v5 = vadd.f32 %v1789_v60, %v1777_v59  ;;  %v432_v27 = vperm.slane %v4804_v4, 1  ;;  %v2655_v59 = vld [vmem:[%s5290_s1 + $0x298] sm:$0xf] }
  0xdf   : > { %2031 = vmatpush.bf16.msrb.mxu2 %v2940_v61  ;;  %2006 = vmatpush.bf16.msrb.mxu0 %v2396_v7  ;;  %v2841_v31 = vld [vmem:[%s5290_s1 + $0x430] sm:$0xf0]  ;;  %v3328_v61 = vor.u32 %v3596_v50, %v3327_v49  ;;  %v2784_v7 = vor.u32 %v3460_v62, %v2783_v58  ;;  %v2943_v49 = vld [vmem:[%s5290_s1 + $0x4d8] sm:$0xf] }
  0xe0   : > { %v3535_v32 = vld [vmem:[%s5290_s1 + $0x614] sm:$0xf]  ;;  %v2844_v48 = vor.u32 %v3471_v28, %v2841_v31  ;;  %v3264_v28 = vor.u32 %v3580_v18, %v3263_v17  ;;  %v3508_v31 = vld [vmem:[%s5290_s1 + $0x534] sm:$0xf0] }
  0xe1   : > { %2044 = vmatpush.bf16.msrb.mxu3 %v3196_v1  ;;  %2019 = vmatpush.bf16.msrb.mxu1 %v2652_v9  ;;  %v3097_v33 = vld [vmem:[%s5290_s1 + $0x630] sm:$0xf0]  ;;  %v1752_v1 = vpop.f32.mrf.mxu0  ;;  %v2495_v9 = vld [vmem:[%s5290_s1 + $0x158] sm:$0xf] }
  0xe2   : > { %v3100_v51 = vor.u32 %v3535_v32, %v3097_v33  ;;  %v3231_v32 = vld [vmem:[%s5290_s1 + $0x718] sm:$0xf] }
  0xe3   : > { %2032 = vmatpush.bf16.msrb.mxu2 %v2908_v10  ;;  %2007 = vmatpush.bf16.msrb.mxu0 %v2364_v20  ;;  %v3388_v10 = vld [vmem:[%s5290_s1 + $0x174] sm:$0xf0] }
  0xe4   : > { %v2496_v19 = vor.u32 %v3388_v10, %v2495_v9  ;;  %v2463_v20 = vld [vmem:[%s5290_s1 + $0x118] sm:$0xf] }
  0xe5   : > { %2045 = vmatpush.bf16.msrb.mxu3 %v3164_v14  ;;  %2020 = vmatpush.bf16.msrb.mxu1 %v2620_v24  ;;  %v3452_v14 = vld [vmem:[%s5290_s1 + $0x374] sm:$0xf0]  ;;  %v1791_v26 = vpop.f32.mrf.mxu3 }
  0xe6   : > { %v2752_v22 = vor.u32 %v3452_v14, %v2751_v11  ;;  %v3380_v24 = vld [vmem:[%s5290_s1 + $0x134] sm:$0xf0] }
  0xe7   : > { %2033 = vmatpush.bf16.msrb.mxu2 %v2876_v25  ;;  %2008 = vmatpush.bf16.msrb.mxu0 %v2332_v41  ;;  %v2719_v25 = vld [vmem:[%s5290_s1 + $0x318] sm:$0xf]  ;;  %v2464_v34 = vor.u32 %v3380_v24, %v2463_v20 }
  0xe8   : > { %v3572_v33 = vld [vmem:[%s5290_s1 + $0x734] sm:$0xf0]  ;;  %v2720_v39 = vor.u32 %v3444_v29, %v2719_v25 }
  0xe9   : > { %2046 = vmatpush.bf16.msrb.mxu3 %v3132_v30  ;;  %2021 = vmatpush.bf16.msrb.mxu1 %v2588_v47  ;;  %v2975_v30 = vld [vmem:[%s5290_s1 + $0x518] sm:$0xf]  ;;  %v1802_v35 = vpop.f32.mrf.mxu0  ;;  %v1815_v46 = vpop.f32.mrf.mxu1  ;;  %v3232_v47 = vor.u32 %v3572_v33, %v3231_v32 }
  0xea   : > { %2009 = vmatmul.bf16.vlgmr.msrb.gmra.mxu0 %v3998_v37  ;;  %v2976_v40 = vor.u32 %v3508_v31, %v2975_v30  ;;  %v2431_v41 = vld [vmem:[%s5290_s1 + $0xd8] sm:$0xf]  ;;  %v1803_v45 = vadd.f32 %v1802_v35, %v432_v27 }
  0xeb   : > { %2034 = vmatpush.bf16.msrb.mxu2 %v2844_v48  ;;  %2053 = vmatpush.bf16.msra.mxu0 %v2560_v52  ;;  %v3436_v48 = vld [vmem:[%s5290_s1 + $0x2f4] sm:$0xf0] }
  0xec   : > { %2022 = vmatmul.bf16.vlgmr.msrb.gmra.mxu1 %v4011_v43  ;;  %v3500_v50 = vld [vmem:[%s5290_s1 + $0x4f4] sm:$0xf0]  ;;  %v1816_v53 = vadd.f32 %v1815_v46, %v1803_v45  ;;  %v3528_v45 = vld [vmem:[%s5290_s1 + $0x5dc] sm:$0xf] }
  0xed   : > { %2047 = vmatpush.bf16.msrb.mxu3 %v3100_v51  ;;  %2066 = vmatpush.bf16.msra.mxu1 %v2816_v54  ;;  %v3199_v51 = vld [vmem:[%s5290_s1 + $0x6d8] sm:$0xf]  ;;  %v2432_v54 = vor.u32 %v3372_v42, %v2431_v41  ;;  %v2944_v56 = vor.u32 %v3500_v50, %v2943_v49  ;;  %v3464_v41 = vld [vmem:[%s5290_s1 + $0x3dc] sm:$0xf] }
  0xee   : > { %2035 = vmatmul.bf16.vlgmr.msrb.gmra.mxu2 %v3996_v36  ;;  %v3564_v52 = vld [vmem:[%s5290_s1 + $0x6f4] sm:$0xf0]  ;;  %v3073_v46 = vld [vmem:[%s5290_s1 + $0x5f8] sm:$0xf0] }
  0xef   : > { %2079 = vmatpush.bf16.msra.mxu2 %v3072_v55  ;;  %2054 = vmatpush.bf16.msra.mxu0 %v2528_v6  ;;  %v2688_v55 = vor.u32 %v3436_v48, %v2687_v44  ;;  %v3364_v58 = vld [vmem:[%s5290_s1 + $0xb4] sm:$0xf0]  ;;  %v2817_v44 = vld [vmem:[%s5290_s1 + $0x3f8] sm:$0xf0] }
  0xf0   : > { %2048 = vmatmul.bf16.vlgmr.msrb.gmra.mxu3 %v4000_v38  ;;  %v3428_v62 = vld [vmem:[%s5290_s1 + $0x2b4] sm:$0xf0]  ;;  %v3592_v49 = vld [vmem:[%s5290_s1 + $0x7dc] sm:$0xf] }
  0xf1   : > { %2092 = vmatpush.bf16.msra.mxu3 %v3328_v61  ;;  %2067 = vmatpush.bf16.msra.mxu1 %v2784_v7  ;;  %v1828_v60 = vpop.f32.mrf.mxu2  ;;  %v3200_v61 = vor.u32 %v3564_v52, %v3199_v51  ;;  %v3492_v0 = vld [vmem:[%s5290_s1 + $0x4b4] sm:$0xf0]  ;;  %v2400_v7 = vor.u32 %v3364_v58, %v2399_v57  ;;  %v1804_v9 = vpop.f32.mrf.mxu0  ;;  %v2656_v10 = vor.u32 %v3428_v62, %v2655_v59  ;;  %v3329_v50 = vld [vmem:[%s5290_s1 + $0x7f8] sm:$0xf0] }
  0xf2   : > { %v1829_v1 = vadd.f32 %v1828_v60, %v1816_v53  ;;  %v3556_v6 = vld [vmem:[%s5290_s1 + $0x6b4] sm:$0xf0]  ;;  %v2912_v11 = vor.u32 %v3492_v0, %v2911_v63  ;;  %v1817_v15 = vpop.f32.mrf.mxu1  ;;  %v2820_v53 = vor.u32 %v3464_v41, %v2817_v44  ;;  %v3456_v57 = vld [vmem:[%s5290_s1 + $0x39c] sm:$0xf]  ;;  %v3332_v58 = vor.u32 %v3592_v49, %v3329_v50 }
  0xf3   : > { %2080 = vmatpush.bf16.msra.mxu2 %v3040_v8  ;;  %2055 = vmatpush.bf16.msra.mxu0 %v2496_v19  ;;  %v1841_v2 = vpop.f32.mrf.mxu3  ;;  %v2367_v12 = vld [vmem:[%s5290_s1 + $0x58] sm:$0xf]  ;;  %v3168_v16 = vor.u32 %v3556_v6, %v3167_v3  ;;  %v2785_v59 = vld [vmem:[%s5290_s1 + $0x3b8] sm:$0xf0] }
  0xf4   : > { %v5012_v8 = vadd.f32 %v1841_v2, %v1829_v1  ;;  %v2623_v14 = vld [vmem:[%s5290_s1 + $0x258] sm:$0xf]  ;;  %v3520_v60 = vld [vmem:[%s5290_s1 + $0x59c] sm:$0xf]  ;;  %v2788_v1 = vor.u32 %v3456_v57, %v2785_v59 }
  0xf5   : > { %2093 = vmatpush.bf16.msra.mxu3 %v3296_v13  ;;  %2068 = vmatpush.bf16.msra.mxu1 %v2752_v22  ;;  %v3356_v13 = vld [vmem:[%s5290_s1 + $0x74] sm:$0xf0]  ;;  %v3584_v62 = vld [vmem:[%s5290_s1 + $0x79c] sm:$0xf] }
  0xf6   : > { %v3420_v17 = vld [vmem:[%s5290_s1 + $0x274] sm:$0xf0]  ;;  %v2368_v22 = vor.u32 %v3356_v13, %v2367_v12  ;;  %v3297_v63 = vld [vmem:[%s5290_s1 + $0x7b8] sm:$0xf0] }
  0xf7   : > { %2081 = vmatpush.bf16.msra.mxu2 %v3008_v23  ;;  %2056 = vmatpush.bf16.msra.mxu0 %v2464_v34  ;;  %v2879_v18 = vld [vmem:[%s5290_s1 + $0x458] sm:$0xf]  ;;  %v2624_v25 = vor.u32 %v3420_v17, %v2623_v14  ;;  %v3384_v3 = vld [vmem:[%s5290_s1 + $0x15c] sm:$0xf]  ;;  %v3300_v9 = vor.u32 %v3584_v62, %v3297_v63 }
  0xf8   : > { %v3484_v19 = vld [vmem:[%s5290_s1 + $0x474] sm:$0xf0]  ;;  %v2497_v6 = vld [vmem:[%s5290_s1 + $0x178] sm:$0xf0] }
  0xf9   : > { %2094 = vmatpush.bf16.msra.mxu3 %v3264_v28  ;;  %2069 = vmatpush.bf16.msra.mxu1 %v2720_v39  ;;  %v3135_v20 = vld [vmem:[%s5290_s1 + $0x658] sm:$0xf]  ;;  %v2880_v26 = vor.u32 %v3484_v19, %v2879_v18  ;;  %v1830_v30 = vpop.f32.mrf.mxu2  ;;  %v3400_v39 = vld [vmem:[%s5290_s1 + $0x1dc] sm:$0xf]  ;;  %v2500_v15 = vor.u32 %v3384_v3, %v2497_v6 }
  0xfa   : > { %v3548_v21 = vld [vmem:[%s5290_s1 + $0x674] sm:$0xf0]  ;;  %v3009_v12 = vld [vmem:[%s5290_s1 + $0x578] sm:$0xf0] }
  0xfb   : > { %2082 = vmatpush.bf16.msra.mxu2 %v2976_v40  ;;  %2057 = vmatpush.bf16.msra.mxu0 %v2432_v54  ;;  %v2335_v23 = vld [vmem:[%s5290_s1 + $0x18] sm:$0xf]  ;;  %v3136_v31 = vor.u32 %v3548_v21, %v3135_v20  ;;  %v1843_v35 = vpop.f32.mrf.mxu3  ;;  %v2561_v40 = vld [vmem:[%s5290_s1 + $0x1f8] sm:$0xf0]  ;;  %v3076_v54 = vor.u32 %v3528_v45, %v3073_v46  ;;  %v433_v21 = vperm.slane %v4804_v4, 2 }
  0xfc   : > { %v3348_v24 = vld [vmem:[%s5290_s1 + $0x34] sm:$0xf0]  ;;  %v2564_v52 = vor.u32 %v3400_v39, %v2561_v40  ;;  %v3576_v13 = vld [vmem:[%s5290_s1 + $0x75c] sm:$0xf] }
  0xfd   : > { %2095 = vmatpush.bf16.msra.mxu3 %v3232_v47  ;;  %2070 = vmatpush.bf16.msra.mxu1 %v2688_v55  ;;  %v2591_v27 = vld [vmem:[%s5290_s1 + $0x218] sm:$0xf]  ;;  %v2336_v42 = vor.u32 %v3348_v24, %v2335_v23  ;;  %v3392_v55 = vld [vmem:[%s5290_s1 + $0x19c] sm:$0xf] }
  0xfe   : > { %v3412_v28 = vld [vmem:[%s5290_s1 + $0x234] sm:$0xf0]  ;;  %v3265_v14 = vld [vmem:[%s5290_s1 + $0x778] sm:$0xf0] }
  0xff   : > { %2083 = vmatpush.bf16.msra.mxu2 %v2944_v56  ;;  %2058 = vmatpush.bf16.msra.mxu0 %v2400_v7  ;;  %v2847_v29 = vld [vmem:[%s5290_s1 + $0x418] sm:$0xf]  ;;  %v2592_v47 = vor.u32 %v3412_v28, %v2591_v27  ;;  %v2529_v56 = vld [vmem:[%s5290_s1 + $0x1b8] sm:$0xf0] }
 0x100   : > { %v3476_v32 = vld [vmem:[%s5290_s1 + $0x434] sm:$0xf0]  ;;  %v2532_v0 = vor.u32 %v3392_v55, %v2529_v56  ;;  %v3448_v7 = vld [vmem:[%s5290_s1 + $0x35c] sm:$0xf] }
 0x101   : > { %2096 = vmatpush.bf16.msra.mxu3 %v3200_v61  ;;  %2071 = vmatpush.bf16.msra.mxu1 %v2656_v10  ;;  %v3103_v33 = vld [vmem:[%s5290_s1 + $0x618] sm:$0xf]  ;;  %v2848_v48 = vor.u32 %v3476_v32, %v2847_v29  ;;  %v3041_v61 = vld [vmem:[%s5290_s1 + $0x5b8] sm:$0xf0] }
 0x102   : > { %v3540_v34 = vld [vmem:[%s5290_s1 + $0x634] sm:$0xf0]  ;;  %v3044_v2 = vor.u32 %v3520_v60, %v3041_v61  ;;  %v2753_v10 = vld [vmem:[%s5290_s1 + $0x378] sm:$0xf0] }
 0x103   : > { %2084 = vmatpush.bf16.msra.mxu2 %v2912_v11  ;;  %2059 = vmatpush.bf16.msra.mxu0 %v2368_v22  ;;  %v3104_v51 = vor.u32 %v3540_v34, %v3103_v33  ;;  %v3512_v11 = vld [vmem:[%s5290_s1 + $0x55c] sm:$0xf]  ;;  %v2756_v17 = vor.u32 %v3448_v7, %v2753_v10  ;;  %v3268_v22 = vor.u32 %v3576_v13, %v3265_v14 }
 0x104   : > { %v3012_v18 = vor.u32 %v3512_v11, %v3009_v12  ;;  %v2465_v19 = vld [vmem:[%s5290_s1 + $0x138] sm:$0xf0] }
 0x105   : > { %2097 = vmatpush.bf16.msra.mxu3 %v3168_v16  ;;  %2072 = vmatpush.bf16.msra.mxu1 %v2624_v25  ;;  %v3376_v16 = vld [vmem:[%s5290_s1 + $0x11c] sm:$0xf] }
 0x106   : > { %v3440_v20 = vld [vmem:[%s5290_s1 + $0x31c] sm:$0xf]  ;;  %v2468_v28 = vor.u32 %v3376_v16, %v2465_v19 }
 0x107   : > { %2085 = vmatpush.bf16.msra.mxu2 %v2880_v26  ;;  %2060 = vmatpush.bf16.msra.mxu0 %v2336_v42  ;;  %v2721_v23 = vld [vmem:[%s5290_s1 + $0x338] sm:$0xf0]  ;;  %v1854_v29 = vpop.f32.mrf.mxu0 }
 0x108   : > { %v3504_v24 = vld [vmem:[%s5290_s1 + $0x51c] sm:$0xf]  ;;  %v2724_v30 = vor.u32 %v3440_v20, %v2721_v23  ;;  %v1855_v35 = vadd.f32 %v1854_v29, %v433_v21 }
 0x109   : > { %2098 = vmatpush.bf16.msra.mxu3 %v3136_v31  ;;  %2073 = vmatpush.bf16.msra.mxu1 %v2592_v47  ;;  %v2977_v25 = vld [vmem:[%s5290_s1 + $0x538] sm:$0xf0]  ;;  %v1867_v39 = vpop.f32.mrf.mxu1 }
 0x10a   : > { %2061 = vmatmul.bf16.vlgmr.msra.gmra.mxu0 %v3998_v37  ;;  %v3568_v26 = vld [vmem:[%s5290_s1 + $0x71c] sm:$0xf]  ;;  %v2980_v31 = vor.u32 %v3504_v24, %v2977_v25  ;;  %v1868_v47 = vadd.f32 %v1867_v39, %v1855_v35  ;;  %v434_v35 = vperm.slane %v4804_v4, 3 }
 0x10b   : > { %2086 = vmatpush.bf16.msra.mxu2 %v2848_v48  ;;  %2105 = vmatpush.bf16.msrb.mxu0 %v2564_v52  ;;  %v3233_v27 = vld [vmem:[%s5290_s1 + $0x738] sm:$0xf0] }
 0x10c   : > { %2074 = vmatmul.bf16.vlgmr.msra.gmra.mxu1 %v4011_v43  ;;  %v3368_v32 = vld [vmem:[%s5290_s1 + $0xdc] sm:$0xf]  ;;  %v3236_v40 = vor.u32 %v3568_v26, %v3233_v27 }
 0x10d   : > { %2099 = vmatpush.bf16.msra.mxu3 %v3104_v51  ;;  %2118 = vmatpush.bf16.msrb.mxu1 %v2820_v53  ;;  %v2433_v33 = vld [vmem:[%s5290_s1 + $0xf8] sm:$0xf0] }
 0x10e   : > { %2087 = vmatmul.bf16.vlgmr.msra.gmra.mxu2 %v3996_v36  ;;  %v3432_v34 = vld [vmem:[%s5290_s1 + $0x2dc] sm:$0xf]  ;;  %v2436_v48 = vor.u32 %v3368_v32, %v2433_v33 }
 0x10f   : > { %2131 = vmatpush.bf16.msrb.mxu2 %v3076_v54  ;;  %2106 = vmatpush.bf16.msrb.mxu0 %v2532_v0  ;;  %v2689_v41 = vld [vmem:[%s5290_s1 + $0x2f8] sm:$0xf0] }
 0x110   : > { %2100 = vmatmul.bf16.vlgmr.msra.gmra.mxu3 %v4000_v38  ;;  %v3496_v42 = vld [vmem:[%s5290_s1 + $0x4dc] sm:$0xf]  ;;  %v2692_v49 = vor.u32 %v3432_v34, %v2689_v41 }
 0x111   : > { %2144 = vmatpush.bf16.msrb.mxu3 %v3332_v58  ;;  %2119 = vmatpush.bf16.msrb.mxu1 %v2788_v1  ;;  %v2945_v44 = vld [vmem:[%s5290_s1 + $0x4f8] sm:$0xf0]  ;;  %v1880_v54 = vpop.f32.mrf.mxu2  ;;  %v1856_v1 = vpop.f32.mrf.mxu0 }
 0x112   : > { %v3560_v45 = vld [vmem:[%s5290_s1 + $0x6dc] sm:$0xf]  ;;  %v2948_v50 = vor.u32 %v3496_v42, %v2945_v44  ;;  %v1881_v59 = vadd.f32 %v1880_v54, %v1868_v47  ;;  %v1869_v10 = vpop.f32.mrf.mxu1 }
 0x113   : > { %2132 = vmatpush.bf16.msrb.mxu2 %v3044_v2  ;;  %2107 = vmatpush.bf16.msrb.mxu0 %v2500_v15  ;;  %v3201_v46 = vld [vmem:[%s5290_s1 + $0x6f8] sm:$0xf0]  ;;  %v1893_v60 = vpop.f32.mrf.mxu3 }
 0x114   : > { %v3360_v51 = vld [vmem:[%s5290_s1 + $0x9c] sm:$0xf]  ;;  %v3204_v55 = vor.u32 %v3560_v45, %v3201_v46  ;;  %v5211_v0 = vadd.f32 %v1893_v60, %v1881_v59 }
 0x115   : > { %2145 = vmatpush.bf16.msrb.mxu3 %v3300_v9  ;;  %2120 = vmatpush.bf16.msrb.mxu1 %v2756_v17  ;;  %v2401_v52 = vld [vmem:[%s5290_s1 + $0xb8] sm:$0xf0] }
 0x116   : > { %v3424_v53 = vld [vmem:[%s5290_s1 + $0x29c] sm:$0xf]  ;;  %v2404_v63 = vor.u32 %v3360_v51, %v2401_v52 }
 0x117   : > { %2133 = vmatpush.bf16.msrb.mxu2 %v3012_v18  ;;  %2108 = vmatpush.bf16.msrb.mxu0 %v2468_v28  ;;  %v2657_v56 = vld [vmem:[%s5290_s1 + $0x2b8] sm:$0xf0] }
 0x118   : > { %v3488_v57 = vld [vmem:[%s5290_s1 + $0x49c] sm:$0xf]  ;;  %v2660_v2 = vor.u32 %v3424_v53, %v2657_v56 }
 0x119   : > { %2146 = vmatpush.bf16.msrb.mxu3 %v3268_v22  ;;  %2121 = vmatpush.bf16.msrb.mxu1 %v2724_v30  ;;  %v2913_v58 = vld [vmem:[%s5290_s1 + $0x4b8] sm:$0xf0]  ;;  %v1882_v23 = vpop.f32.mrf.mxu2 }
 0x11a   : > { %v3552_v61 = vld [vmem:[%s5290_s1 + $0x69c] sm:$0xf]  ;;  %v2916_v3 = vor.u32 %v3488_v57, %v2913_v58 }
 0x11b   : > { %2134 = vmatpush.bf16.msrb.mxu2 %v2980_v31  ;;  %v3169_v62 = vld [vmem:[%s5290_s1 + $0x6b8] sm:$0xf0]  ;;  %2109 = vmatpush.bf16.msrb.mxu0 %v2436_v48  ;;  %v1895_v28 = vpop.f32.mrf.mxu3 }
 0x11c   : > { %v3352_v6 = vld [vmem:[%s5290_s1 + $0x5c] sm:$0xf]  ;;  %v3172_v11 = vor.u32 %v3552_v61, %v3169_v62 }
 0x11d   : > { %2147 = vmatpush.bf16.msrb.mxu3 %v3236_v40  ;;  %2122 = vmatpush.bf16.msrb.mxu1 %v2692_v49  ;;  %v2369_v7 = vld [vmem:[%s5290_s1 + $0x78] sm:$0xf0] }
 0x11e   : > { %v3416_v9 = vld [vmem:[%s5290_s1 + $0x25c] sm:$0xf]  ;;  %v2372_v17 = vor.u32 %v3352_v6, %v2369_v7 }
 0x11f   : > { %2135 = vmatpush.bf16.msrb.mxu2 %v2948_v50  ;;  %v2625_v12 = vld [vmem:[%s5290_s1 + $0x278] sm:$0xf0]  ;;  %2110 = vmatpush.bf16.msrb.mxu0 %v2404_v63 }
 0x120   : > { %v3480_v13 = vld [vmem:[%s5290_s1 + $0x45c] sm:$0xf]  ;;  %v2628_v18 = vor.u32 %v3416_v9, %v2625_v12 }
 0x121   : > { %2148 = vmatpush.bf16.msrb.mxu3 %v3204_v55  ;;  %v2881_v14 = vld [vmem:[%s5290_s1 + $0x478] sm:$0xf0]  ;;  %2123 = vmatpush.bf16.msrb.mxu1 %v2660_v2  ;;  %v436_v2 = vperm.slane %v4804_v4, 5 }
 0x122   : > { %v3544_v15 = vld [vmem:[%s5290_s1 + $0x65c] sm:$0xf]  ;;  %v2884_v19 = vor.u32 %v3480_v13, %v2881_v14 }
 0x123   : > { %v3137_v16 = vld [vmem:[%s5290_s1 + $0x678] sm:$0xf0]  ;;  %2136 = vmatpush.bf16.msrb.mxu2 %v2916_v3  ;;  %2111 = vmatpush.bf16.msrb.mxu0 %v2372_v17 }
 0x124   : > { %v3344_v20 = vld [vmem:[%s5290_s1 + $0x1c] sm:$0xf]  ;;  %v3140_v24 = vor.u32 %v3544_v15, %v3137_v16 }
 0x125   : > { %v2337_v21 = vld [vmem:[%s5290_s1 + $0x38] sm:$0xf0]  ;;  %2149 = vmatpush.bf16.msrb.mxu3 %v3172_v11  ;;  %2124 = vmatpush.bf16.msrb.mxu1 %v2628_v18 }
 0x126   : > { %v3408_v22 = vld [vmem:[%s5290_s1 + $0x21c] sm:$0xf]  ;;  %v2340_v31 = vor.u32 %v3344_v20, %v2337_v21 }
 0x127   : > { %v2593_v25 = vld [vmem:[%s5290_s1 + $0x238] sm:$0xf0]  ;;  %2137 = vmatpush.bf16.msrb.mxu2 %v2884_v19  ;;  %v1906_v39 = vpop.f32.mrf.mxu0 }
 0x128   : > { %v3472_v26 = vld [vmem:[%s5290_s1 + $0x41c] sm:$0xf]  ;;  %v2596_v32 = vor.u32 %v3408_v22, %v2593_v25  ;;  %2112 = vmatpush.bf16.msrb.mxu0 %v2340_v31  ;;  %v1907_v40 = vadd.f32 %v1906_v39, %v434_v35 }
 0x129   : > { %v2849_v27 = vld [vmem:[%s5290_s1 + $0x438] sm:$0xf0]  ;;  %2150 = vmatpush.bf16.msrb.mxu3 %v3140_v24  ;;  %v1919_v41 = vpop.f32.mrf.mxu1 }
 0x12a   : > { %v3536_v29 = vld [vmem:[%s5290_s1 + $0x61c] sm:$0xf]  ;;  %v2852_v33 = vor.u32 %v3472_v26, %v2849_v27  ;;  %2125 = vmatpush.bf16.msrb.mxu1 %v2596_v32  ;;  %v1920_v42 = vadd.f32 %v1919_v41, %v1907_v40  ;;  %v437_v32 = vperm.slane %v4804_v4, 6 }
 0x12b   : > { %v3105_v30 = vld [vmem:[%s5290_s1 + $0x638] sm:$0xf0]  ;;  %2113 = vmatmul.bf16.vlgmr.msrb.gmra.mxu0 %v3998_v37 }
 0x12c   : > { %v3108_v34 = vor.u32 %v3536_v29, %v3105_v30  ;;  %2138 = vmatpush.bf16.msrb.mxu2 %v2852_v33 }
 0x12d   : > { %2126 = vmatmul.bf16.vlgmr.msrb.gmra.mxu1 %v4011_v43  ;;  %v435_v43 = vperm.slane %v4804_v4, 4 }
 0x12e   : > { %2151 = vmatpush.bf16.msrb.mxu3 %v3108_v34 }
 0x12f   : > { %2139 = vmatmul.bf16.vlgmr.msrb.gmra.mxu2 %v3996_v36  ;;  %v1908_v48 = vpop.f32.mrf.mxu0 }
 0x131   : > { %2152 = vmatmul.bf16.vlgmr.msrb.gmra.mxu3 %v4000_v38  ;;  %v1932_v44 = vpop.f32.mrf.mxu2  ;;  %v1921_v49 = vpop.f32.mrf.mxu1 }
 0x132   : > { %v1933_v45 = vadd.f32 %v1932_v44, %v1920_v42 }
 0x133   : > { %v1945_v46 = vpop.f32.mrf.mxu3 }
 0x134   : > { %v5266_v47 = vadd.f32 %v1945_v46, %v1933_v45 }
 0x139   : > { %v1934_v37 = vpop.f32.mrf.mxu2 }
 0x13b   : > { %v1947_v50 = vpop.f32.mrf.mxu3 }
 0x147   : > { %v1958_v36 = vpop.f32.mrf.mxu0 }
 0x148   : > { %v1959_v51 = vadd.f32 %v1958_v36, %v435_v43 }
 0x149   : > { %v1971_v38 = vpop.f32.mrf.mxu1 }
 0x14a   : > { %v1972_v52 = vadd.f32 %v1971_v38, %v1959_v51 }
 0x14f   : > { %v1960_v57 = vpop.f32.mrf.mxu0 }
 0x151   : > { %v1984_v53 = vpop.f32.mrf.mxu2  ;;  %v1973_v58 = vpop.f32.mrf.mxu1 }
 0x152   : > { %v1985_v54 = vadd.f32 %v1984_v53, %v1972_v52 }
 0x153   : > { %v1997_v55 = vpop.f32.mrf.mxu3 }
 0x154   : > { %v1998_v56 = vadd.f32 %v1997_v55, %v1985_v54 }
 0x156   : > { %v3333_v59 = vmul.f32 -1.442695, %v1998_v56 }
 0x158   : > { %3605 = vpow2.f32 %v3333_v59  ;;  %v438_v59 = vperm.slane %v4804_v4, 7 }
 0x159   : > { %v1986_v60 = vpop.f32.mrf.mxu2 }
 0x15b   : > { %v1999_v61 = vpop.f32.mrf.mxu3 }
 0x15e   : > { %v3606_v62 = vpop.eup %3605 }
 0x15f   : > { %v2173_v63 = vadd.f32 1.0, %v3606_v62 }
 0x161   : > { %3607 = vrcp.f32 %v2173_v63  ;;  %v2188_v6 = vand.u32 2147483648, %v2173_v63  ;;  %vm2182_vm0 = vweird.f32 %v2173_v63  ;;  %v2186_v9 = vand.u32 2147483647, %v2173_v63 }
 0x162   : > { %3609 = vtanh.f32 %v4909_v5 }
 0x163   : > { %v2189_v14 = vor.u32 1.1754944e-38, %v2188_v6  ;;  %vm2187_vm3 = vcmp.eq.f32.partialorder %v2186_v9, 8.507059e+37 }
 0x167   : > { %v3608_v1 = vpop.eup %3607  ;;  %v2010_v10 = vpop.f32.mrf.mxu0 }
 0x168   : > { %v2178_v3 = vmul.f32 %v3608_v1, %v2173_v63  ;;  %vm2183_vm1 = vweird.f32 %v3608_v1  ;;  %v2011_v11 = vadd.f32 %v2010_v10, %v436_v2  ;;  %v3610_v21 = vpop.eup %3609 }
 0x169   : > { %v2023_v12 = vpop.f32.mrf.mxu1  ;;  %vm2184_vm2 = vmor %vm2182_vm0, %vm2183_vm1 }
 0x16a   : > { %v2179_v7 = vsub.f32 1.0, %v2178_v3  ;;  %v2024_v15 = vadd.f32 %v2023_v12, %v2011_v11 }
 0x16c   : > { %v2180_v13 = vmul.f32 %v3608_v1, %v2179_v7 }
 0x16e   : > { %v2181_v16 = vadd.f32 %v3608_v1, %v2180_v13 }
 0x16f   : > { %v2012_v24 = vpop.f32.mrf.mxu0 }
 0x170   : > { %v2185_v18 = vsel %vm2184_vm2, %v3608_v1, %v2181_v16 }
 0x171   : > { %v2036_v17 = vpop.f32.mrf.mxu2  ;;  %v2190_v5 = vsel %vm2187_vm3, %v2189_v14, %v2185_v18  ;;  %v2025_v25 = vpop.f32.mrf.mxu1 }
 0x172   : > { %v2037_v19 = vadd.f32 %v2036_v17, %v2024_v15  ;;  %v2237_v22 = vmul.f32 %v3610_v21, %v2190_v5 }
 0x173   : > { %v2049_v20 = vpop.f32.mrf.mxu3 }
 0x174   : > { %v2050_v23 = vadd.f32 %v2049_v20, %v2037_v19  ;;  %2241 = vst [vmem:[%s5275_s22] sm:$0xff] %v2237_v22 }
 0x176   : > { %v3334_v26 = vmul.f32 -1.442695, %v2050_v23 }
 0x178   : > { %3611 = vpow2.f32 %v3334_v26 }
 0x179   : > { %v2038_v27 = vpop.f32.mrf.mxu2 }
 0x17b   : > { %v2051_v28 = vpop.f32.mrf.mxu3 }
 0x17e   : > { %v3612_v29 = vpop.eup %3611 }
 0x17f   : > { %v2174_v30 = vadd.f32 1.0, %v3612_v29 }
 0x181   : > { %3613 = vrcp.f32 %v2174_v30  ;;  %v2203_v34 = vand.u32 2147483648, %v2174_v30  ;;  %vm2197_vm4 = vweird.f32 %v2174_v30  ;;  %v2201_v39 = vand.u32 2147483647, %v2174_v30 }
 0x182   : > { %3615 = vtanh.f32 %v5012_v8 }
 0x183   : > { %v2204_v45 = vor.u32 1.1754944e-38, %v2203_v34  ;;  %vm2202_vm7 = vcmp.eq.f32.partialorder %v2201_v39, 8.507059e+37 }
 0x187   : > { %v3614_v31 = vpop.eup %3613  ;;  %v2062_v40 = vpop.f32.mrf.mxu0 }
 0x188   : > { %v2193_v33 = vmul.f32 %v3614_v31, %v2174_v30  ;;  %vm2198_vm5 = vweird.f32 %v3614_v31  ;;  %v2063_v41 = vadd.f32 %v2062_v40, %v437_v32  ;;  %v3616_v36 = vpop.eup %3615 }
 0x189   : > { %v2075_v42 = vpop.f32.mrf.mxu1  ;;  %vm2199_vm6 = vmor %vm2197_vm4, %vm2198_vm5 }
 0x18a   : > { %v2194_v35 = vsub.f32 1.0, %v2193_v33  ;;  %v2076_v46 = vadd.f32 %v2075_v42, %v2063_v41 }
 0x18c   : > { %v2195_v44 = vmul.f32 %v3614_v31, %v2194_v35 }
 0x18e   : > { %v2196_v48 = vadd.f32 %v3614_v31, %v2195_v44 }
 0x18f   : > { %v2064_v53 = vpop.f32.mrf.mxu0 }
 0x190   : > { %v2200_v37 = vsel %vm2199_vm6, %v3614_v31, %v2196_v48 }
 0x191   : > { %v2088_v49 = vpop.f32.mrf.mxu2  ;;  %v2205_v51 = vsel %vm2202_vm7, %v2204_v45, %v2200_v37  ;;  %v2077_v54 = vpop.f32.mrf.mxu1 }
 0x192   : > { %v2089_v50 = vadd.f32 %v2088_v49, %v2076_v46  ;;  %v2238_v38 = vmul.f32 %v3616_v36, %v2205_v51 }
 0x193   : > { %v2101_v43 = vpop.f32.mrf.mxu3 }
 0x194   : > { %v2102_v52 = vadd.f32 %v2101_v43, %v2089_v50  ;;  %2242 = vst [vmem:[%s5275_s22 + $0x8] sm:$0xff] %v2238_v38 }
 0x196   : > { %v3335_v8 = vmul.f32 -1.442695, %v2102_v52 }
 0x198   : > { %3617 = vpow2.f32 %v3335_v8 }
 0x199   : > { %v2090_v55 = vpop.f32.mrf.mxu2 }
 0x19b   : > { %v2103_v56 = vpop.f32.mrf.mxu3 }
 0x19e   : > { %v3618_v57 = vpop.eup %3617 }
 0x19f   : > { %v2175_v58 = vadd.f32 1.0, %v3618_v57 }
 0x1a1   : > { %3619 = vrcp.f32 %v2175_v58  ;;  %v2218_v63 = vand.u32 2147483648, %v2175_v58  ;;  %vm2212_vm8 = vweird.f32 %v2175_v58  ;;  %v2216_v6 = vand.u32 2147483647, %v2175_v58 }
 0x1a2   : > { %3621 = vtanh.f32 %v5211_v0 }
 0x1a3   : > { %v2219_v10 = vor.u32 1.1754944e-38, %v2218_v63  ;;  %vm2217_vm11 = vcmp.eq.f32.partialorder %v2216_v6, 8.507059e+37 }
 0x1a7   : > { %v3620_v60 = vpop.eup %3619 }
 0x1a8   : > { %v2208_v61 = vmul.f32 %v3620_v60, %v2175_v58  ;;  %v2114_v62 = vpop.f32.mrf.mxu0  ;;  %vm2213_vm9 = vweird.f32 %v3620_v60  ;;  %v3622_v16 = vpop.eup %3621 }
 0x1a9   : > { %v2115_v1 = vadd.f32 %v2114_v62, %v438_v59  ;;  %vm2214_vm10 = vmor %vm2212_vm8, %vm2213_vm9 }
 0x1aa   : > { %v2127_v2 = vpop.f32.mrf.mxu1  ;;  %v2209_v3 = vsub.f32 1.0, %v2208_v61 }
 0x1ab   : > { %v2128_v9 = vadd.f32 %v2127_v2, %v2115_v1 }
 0x1ac   : > { %v2210_v7 = vmul.f32 %v3620_v60, %v2209_v3 }
 0x1ae   : > { %v2211_v11 = vadd.f32 %v3620_v60, %v2210_v7 }
 0x1b0   : > { %v2215_v12 = vsel %vm2214_vm10, %v3620_v60, %v2211_v11  ;;  %v2116_v15 = vpop.f32.mrf.mxu0 }
 0x1b1   : > { %v2220_v17 = vsel %vm2217_vm11, %v2219_v10, %v2215_v12 }
 0x1b2   : > { %v2140_v4 = vpop.f32.mrf.mxu2  ;;  %v2129_v18 = vpop.f32.mrf.mxu1  ;;  %v2239_v19 = vmul.f32 %v3622_v16, %v2220_v17 }
 0x1b3   : > { %v2141_v13 = vadd.f32 %v2140_v4, %v2128_v9 }
 0x1b4   : > { %v2153_v14 = vpop.f32.mrf.mxu3  ;;  %2243 = vst [vmem:[%s5275_s22 + $0x10] sm:$0xff] %v2239_v19 }
 0x1b5   : > { %v2154_v20 = vadd.f32 %v2153_v14, %v2141_v13 }
 0x1b7   : > { %v3336_v21 = vmul.f32 -1.442695, %v2154_v20 }
 0x1b9   : > { %3623 = vpow2.f32 %v3336_v21 }
 0x1ba   : > { %v2142_v0 = vpop.f32.mrf.mxu2 }
 0x1bc   : > { %v2155_v5 = vpop.f32.mrf.mxu3 }
 0x1bf   : > { %v3624_v22 = vpop.eup %3623 }
 0x1c0   : > { %v2176_v23 = vadd.f32 1.0, %v3624_v22 }
 0x1c2   : > { %3625 = vrcp.f32 %v2176_v23  ;;  %v2233_v27 = vand.u32 2147483648, %v2176_v23  ;;  %v2231_v29 = vand.u32 2147483647, %v2176_v23  ;;  %vm2227_vm13 = vweird.f32 %v2176_v23 }
 0x1c3   : > { %3627 = vtanh.f32 %v5266_v47 }
 0x1c4   : > { %v2234_v31 = vor.u32 1.1754944e-38, %v2233_v27  ;;  %vm2232_vm15 = vcmp.eq.f32.partialorder %v2231_v29, 8.507059e+37 }
 0x1c8   : > { %v3626_v24 = vpop.eup %3625 }
 0x1c9   : > { %v2223_v25 = vmul.f32 %v3626_v24, %v2176_v23  ;;  %vm2228_vm12 = vweird.f32 %v3626_v24  ;;  %v3628_v33 = vpop.eup %3627 }
 0x1ca   : > { %vm2229_vm14 = vmor %vm2227_vm13, %vm2228_vm12 }
 0x1cb   : > { %v2224_v26 = vsub.f32 1.0, %v2223_v25 }
 0x1cd   : > { %v2225_v28 = vmul.f32 %v3626_v24, %v2224_v26 }
 0x1cf   : > { %v2226_v30 = vadd.f32 %v3626_v24, %v2225_v28 }
 0x1d1   : > { %v2230_v32 = vsel %vm2229_vm14, %v3626_v24, %v2226_v30 }
 0x1d2   : > { %v2235_v34 = vsel %vm2232_vm15, %v2234_v31, %v2230_v32 }
 0x1d3   : > { %v2240_v35 = vmul.f32 %v3628_v33, %v2235_v34 }
 0x1d5   : > { %2244 = vst [vmem:[%s5275_s22 + $0x18] sm:$0xff] %v2240_v35 }
 0x1d6 PF: > { %s13_s12 = sadd.s32 1, %s3635_s12  }
 0x1d7   : > { %p10_p4 = scmp.ge.s32.totalorder %s13_s12, 4  }
 0x1d9   :  { %12 = sbr.rel (!%p10_p4) target bundleno = 1 (0x1), region = 62 }

</bundles_post_ra>
